<compile_context>
chip_gen: v5e
topology: v5e:2x2
jax: 0.10.0
libtpu: 0.0.40
codegen_flags: <defaults>
</compile_context>

<pallas_src>
import functools

import jax
import jax.numpy as jnp
from jax.experimental import pallas as pl
from jax.experimental.pallas import tpu as pltpu

DEPTH = 4
BN_EPS = 1e-5
LANE = 128
_TILE_BUDGET_BYTES = 16 * 1024 * 1024   # per-grid-step VMEM budget for tile choice


# ----------------------------------------------------------------------------- kernels

def _combine_levels(m_fine, wl_ref, bias_ref, depth):
    """All pooling-level contributions combined at the finest (nb x nb) grid.

    m_fine : (nb, nb, Cp) finest block maxima (native dtype)
    wl_ref : (depth, Cp, Cp) folded per-level weights
    bias_ref: (1, Cp) f32 folded bias
    returns (nb, nb, Cp) float32
    """
    nb, _, Cp = m_fine.shape
    small = jnp.broadcast_to(bias_ref[...].reshape(1, 1, Cp),
                             (nb, nb, Cp)).astype(jnp.float32)
    m = m_fine                                   # (2^d, 2^d, Cp), starts at d = depth-1
    for d in range(depth - 1, -1, -1):
        nd = 2 ** d
        rep = nb // nd
        pooled = jnp.broadcast_to(m.reshape(nd, 1, nd, 1, Cp),
                                  (nd, rep, nd, rep, Cp)).reshape(nb * nb, Cp)
        y = jnp.dot(pooled, wl_ref[d], preferred_element_type=jnp.float32)
        small = small + y.reshape(nb, nb, Cp)
        if d > 0:
            m = jnp.max(m.reshape(nd // 2, 2, nd // 2, 2, Cp), axis=(1, 3))
    return small


def _psp_fused_kernel(x_ref, w0_ref, wl_ref, b_ref, o_ref, *, depth):
    """Single-tile path: whole (H, W, Cp) image per grid step."""
    x = x_ref[0]                                          # (H, W, Cp) native dtype
    H, W, Cp = x.shape
    nb = 2 ** (depth - 1)
    bh, bw = H // nb, W // nb

    m_fine = jnp.max(x.reshape(nb, bh, nb, bw, Cp), axis=(1, 3))     # (nb, nb, Cp)
    small = _combine_levels(m_fine, wl_ref, b_ref, depth)            # f32

    acc = jnp.dot(x.reshape(H * W, Cp), w0_ref[...],
                  preferred_element_type=jnp.float32).reshape(H, W, Cp)
    lvl = jnp.broadcast_to(small.reshape(nb, 1, nb, 1, Cp),
                           (nb, bh, nb, bw, Cp)).reshape(H, W, Cp)
    o_ref[0] = (acc + lvl).astype(o_ref.dtype)


def _blockmax_kernel(x_ref, m_ref, *, nb, rpb):
    """Prepass: finest block maxima for one row-tile of pooling blocks."""
    x = x_ref[0]                                          # (tH, W, Cp)
    tH, W, Cp = x.shape
    bh, bw = tH // rpb, W // nb
    m_ref[0] = jnp.max(x.reshape(rpb, bh, nb, bw, Cp), axis=(1, 3))  # (rpb, nb, Cp)


def _psp_tiled_kernel(x_ref, m_ref, w0_ref, wl_ref, b_ref, o_ref, small_ref,
                      *, depth, rpb):
    """Spatially tiled path: one row-tile of pooling blocks per grid step."""
    i = pl.program_id(1)
    x = x_ref[0]                                          # (tH, W, Cp) native dtype
    tH, W, Cp = x.shape
    nb = 2 ** (depth - 1)
    bh, bw = tH // rpb, W // nb

    small_ref[...] = _combine_levels(m_ref[0], wl_ref, b_ref, depth)
    rows = small_ref[pl.ds(i * rpb, rpb)]                 # (rpb, nb, Cp) f32

    acc = jnp.dot(x.reshape(tH * W, Cp), w0_ref[...],
                  preferred_element_type=jnp.float32).reshape(tH, W, Cp)
    lvl = jnp.broadcast_to(rows.reshape(rpb, 1, nb, 1, Cp),
                           (rpb, bh, nb, bw, Cp)).reshape(tH, W, Cp)
    o_ref[0] = (acc + lvl).astype(o_ref.dtype)


# ----------------------------------------------------------------------------- wrapper

def _fold_bn(gamma, beta, mean, var, eps=BN_EPS):
    scale = gamma / jnp.sqrt(var + eps)
    shift = beta - mean * scale
    return scale, shift


def _fold_params(params, C, Cp, depth, dtype):
    """Fold level convs + level BNs + final conv + final BN into:
         W0   : (Cp, Cp)         weight for the raw-input segment
         Wlvl : (depth, Cp, Cp)  one combined weight per pooling level
         bias : (1, Cp) f32      single output bias
    """
    f32 = jnp.float32
    wl_t = jnp.transpose(params["level_w"], (0, 2, 1)).astype(f32)   # (d, Cin, Cout)
    sl, bl = _fold_bn(params["level_gamma"].astype(f32), params["level_beta"].astype(f32),
                      params["level_mean"].astype(f32), params["level_var"].astype(f32))
    sf, bf = _fold_bn(params["final_gamma"].astype(f32), params["final_beta"].astype(f32),
                      params["final_mean"].astype(f32), params["final_var"].astype(f32))
    wf = params["final_w"].astype(f32)                               # (C, (depth+1)*C)
    # per-concat-segment final weight with final-BN scale folded in
    wf_segs = [wf[:, s * C:(s + 1) * C].T * sf[None, :] for s in range(depth + 1)]

    w0 = wf_segs[0]                                                  # (C, C)
    wlvl = [(wl_t[d] * sl[d][None, :]) @ wf_segs[d + 1] for d in range(depth)]
    bias = bf
    for d in range(depth):
        bias = bias + bl[d] @ wf_segs[d + 1]

    def pad_w(w):
        return jnp.zeros((Cp, Cp), f32).at[:C, :C].set(w)

    w0_p = pad_w(w0).astype(dtype)
    wlvl_p = jnp.stack([pad_w(w) for w in wlvl], axis=0).astype(dtype)
    bias_p = jnp.zeros((1, Cp), f32).at[0, :C].set(bias)
    return w0_p, wlvl_p, bias_p


def _est_step_bytes(tH, W, Cp, nb, depth, itemsize):
    tile = tH * W * Cp
    io_bytes = tile * itemsize * 4                 # double-buffered input + output tiles
    f32_tmp = tile * 4 * 2                         # f32 matmul acc + broadcast temp
    fixed = (depth + 1) * Cp * Cp * itemsize * 2 + 3 * nb * nb * Cp * 4
    return io_bytes + f32_tmp + fixed


def _pick_block_rows(H, W, Cp, nb, depth, itemsize, budget=_TILE_BUDGET_BYTES):
    """Largest number of pooling-block rows per spatial tile that fits the budget."""
    bh = H // nb
    best = 1
    for k in range(1, nb + 1):
        if nb % k:
            continue
        if _est_step_bytes(bh * k, W, Cp, nb, depth, itemsize) <= budget:
            best = k
    return best
    # TODO(synk): for extremely large W*Cp even a single block-row tile may exceed
    #             VMEM; tiling along W as well is not implemented.


def psp_pooling_forward(x_nchw, params, depth=DEPTH, force_block_rows=None):
    """PSP_Pooling forward. x_nchw: (N, C, H, W) -> (N, C, H, W)."""
    N, C, H, W = x_nchw.shape
    nb = 2 ** (depth - 1)
    assert H % nb == 0 and W % nb == 0, "H, W must be divisible by 2**(depth-1)"

    dtype = x_nchw.dtype
    Cp = ((C + LANE - 1) // LANE) * LANE
    itemsize = jnp.dtype(dtype).itemsize

    w0, wlvl, bias = _fold_params(params, C, Cp, depth, dtype)

    # NCHW -> NHWC (channels last -> lane dim), zero-pad channels to lane width.
    x = jnp.transpose(x_nchw, (0, 2, 3, 1))
    if Cp != C:
        x = jnp.pad(x, ((0, 0), (0, 0), (0, 0), (0, Cp - C)))

    bh = H // nb
    if force_block_rows is not None:
        k = int(force_block_rows)
        assert nb % k == 0
    else:
        k = _pick_block_rows(H, W, Cp, nb, depth, itemsize)
    rpb = k                        # pooling-block rows per spatial tile
    tH = bh * k                    # rows per spatial tile
    ntiles = nb // k

    est = _est_step_bytes(tH, W, Cp, nb, depth, itemsize)
    vmem_limit = int(min(max(2 * est, 32 << 20), 56 << 20))

    if ntiles == 1:
        kernel = functools.partial(_psp_fused_kernel, depth=depth)
        out = pl.pallas_call(
            kernel,
            out_shape=jax.ShapeDtypeStruct((N, H, W, Cp), dtype),
            grid_spec=pltpu.PrefetchScalarGridSpec(
                num_scalar_prefetch=0,
                grid=(N,),
                in_specs=[
                    pl.BlockSpec((1, H, W, Cp), lambda n: (n, 0, 0, 0)),
                    pl.BlockSpec((Cp, Cp), lambda n: (0, 0)),
                    pl.BlockSpec((depth, Cp, Cp), lambda n: (0, 0, 0)),
                    pl.BlockSpec((1, Cp), lambda n: (0, 0)),
                ],
                out_specs=pl.BlockSpec((1, H, W, Cp), lambda n: (n, 0, 0, 0)),
            ),
            compiler_params=pltpu.CompilerParams(
                dimension_semantics=("parallel",),
                vmem_limit_bytes=vmem_limit),
        )(x, w0, wlvl, bias)
    else:
        # Prepass: finest block maxima (N, nb, nb, Cp), tiled over block rows.
        bm_kernel = functools.partial(_blockmax_kernel, nb=nb, rpb=rpb)
        m_fine = pl.pallas_call(
            bm_kernel,
            out_shape=jax.ShapeDtypeStruct((N, nb, nb, Cp), dtype),
            grid_spec=pltpu.PrefetchScalarGridSpec(
                num_scalar_prefetch=0,
                grid=(N, ntiles),
                in_specs=[pl.BlockSpec((1, tH, W, Cp), lambda n, i: (n, i, 0, 0))],
                out_specs=pl.BlockSpec((1, rpb, nb, Cp), lambda n, i: (n, i, 0, 0)),
            ),
            compiler_params=pltpu.CompilerParams(
                dimension_semantics=("parallel", "parallel"),
                vmem_limit_bytes=vmem_limit),
        )(x)

        kernel = functools.partial(_psp_tiled_kernel, depth=depth, rpb=rpb)
        out = pl.pallas_call(
            kernel,
            out_shape=jax.ShapeDtypeStruct((N, H, W, Cp), dtype),
            grid_spec=pltpu.PrefetchScalarGridSpec(
                num_scalar_prefetch=0,
                grid=(N, ntiles),
                in_specs=[
                    pl.BlockSpec((1, tH, W, Cp), lambda n, i: (n, i, 0, 0)),
                    pl.BlockSpec((1, nb, nb, Cp), lambda n, i: (n, 0, 0, 0)),
                    pl.BlockSpec((Cp, Cp), lambda n, i: (0, 0)),
                    pl.BlockSpec((depth, Cp, Cp), lambda n, i: (0, 0, 0)),
                    pl.BlockSpec((1, Cp), lambda n, i: (0, 0)),
                ],
                out_specs=pl.BlockSpec((1, tH, W, Cp), lambda n, i: (n, i, 0, 0)),
                scratch_shapes=[pltpu.VMEM((nb, nb, Cp), jnp.float32)],
            ),
            compiler_params=pltpu.CompilerParams(
                dimension_semantics=("parallel", "parallel"),
                vmem_limit_bytes=vmem_limit),
        )(x, m_fine, w0, wlvl, bias)

    out = out[..., :C]
    return jnp.transpose(out, (0, 3, 1, 2))                # back to NCHW


# ----------------------------------------------------------------------------- reference

def psp_pooling_reference(x_nchw, params, depth=DEPTH):
    """Pure-JAX reference mirroring the PyTorch forward (eval-mode BN)."""
    N, C, H, W = x_nchw.shape

    def bn(z, g, b, m, v):
        return ((z - m[None, :, None, None])
                / jnp.sqrt(v + BN_EPS)[None, :, None, None]
                * g[None, :, None, None] + b[None, :, None, None])

    def conv1x1(z, w):  # w: (C_out, C_in)
        return jnp.einsum('nchw,oc->nohw', z, w)

    def block_pool(z, nbk):
        bh, bw = H // nbk, W // nbk
        zr = z.reshape(N, C, nbk, bh, nbk, bw)
        m = zr.max(axis=(3, 5), keepdims=True)
        return jnp.broadcast_to(m, zr.shape).reshape(N, C, H, W)

    p = [x_nchw]
    for d in range(depth):
        pooled = block_pool(x_nchw, 2 ** d)
        y = conv1x1(pooled, params["level_w"][d])
        y = bn(y, params["level_gamma"][d], params["level_beta"][d],
               params["level_mean"][d], params["level_var"][d])
        p.append(y)
    cat = jnp.concatenate(p, axis=1)
    out = conv1x1(cat, params["final_w"])
    out = bn(out, params["final_gamma"], params["final_beta"],
             params["final_mean"], params["final_var"])
    return out


if __name__ == "__main__":
    N, C, H, W = 2, 8, 16, 16

    key = jax.random.PRNGKey(0)
    ks = jax.random.split(key, 11)

    params = {
        "level_w":     0.2 * jax.random.normal(ks[0], (DEPTH, C, C), jnp.float32),
        "level_gamma": 1.0 + 0.1 * jax.random.normal(ks[1], (DEPTH, C), jnp.float32),
        "level_beta":  0.05 * jax.random.normal(ks[2], (DEPTH, C), jnp.float32),
        "level_mean":  0.1 * jax.random.normal(ks[3], (DEPTH, C), jnp.float32),
        "level_var":   1.0 + 0.1 * jax.random.uniform(ks[4], (DEPTH, C), jnp.float32),
        "final_w":     0.2 * jax.random.normal(ks[5], (C, (DEPTH + 1) * C), jnp.float32),
        "final_gamma": 1.0 + 0.1 * jax.random.normal(ks[6], (C,), jnp.float32),
        "final_beta":  0.05 * jax.random.normal(ks[7], (C,), jnp.float32),
        "final_mean":  0.1 * jax.random.normal(ks[8], (C,), jnp.float32),
        "final_var":   1.0 + 0.1 * jax.random.uniform(ks[9], (C,), jnp.float32),
    }
    x = jax.random.normal(ks[10], (N, C, H, W), jnp.float32)

    ref = jax.block_until_ready(psp_pooling_reference(x, params))

    # Fused single-tile path (what runs when the whole image fits VMEM).
    out = jax.block_until_ready(psp_pooling_forward(x, params))
    assert out.shape == (N, C, H, W)
    if not jnp.allclose(out, ref, atol=5e-3, rtol=5e-3):
        raise AssertionError("Pallas fused kernel output mismatch vs JAX reference")

    # Spatially tiled two-kernel path (exercised explicitly: 2 block rows / tile).
    out_t = jax.block_until_ready(psp_pooling_forward(x, params, force_block_rows=2))
    if not jnp.allclose(out_t, ref, atol=5e-3, rtol=5e-3):
        raise AssertionError("Pallas tiled kernel output mismatch vs JAX reference")

    print("KERNEL_OK")
</pallas_src>

<mosaic_0001>
module attributes {stable_mosaic.version = 11 : i64} {
  func.func @_psp_fused_kernel(%arg0: i32, %arg1: memref<1x16x16x128xf32, #tpu.memory_space<vmem>>, %arg2: memref<128x128xf32, #tpu.memory_space<vmem>>, %arg3: memref<4x128x128xf32, #tpu.memory_space<vmem>>, %arg4: memref<1x128xf32, #tpu.memory_space<vmem>>, %arg5: memref<1x16x16x128xf32, #tpu.memory_space<vmem>>) attributes {dimension_semantics = [#tpu.dimension_semantics<parallel>], iteration_bounds = array<i64: 2>, scalar_prefetch = 0 : i64, scratch_operands = 0 : i64, tpu.core_type = #tpu.core_type<tc>, window_params = [{transform_indices = @transform_0, window_bounds = array<i64: 1, 16, 16, 128>}, {pipeline_mode = #tpu.pipeline_mode<synchronous>, transform_indices = @transform_1, window_bounds = array<i64: 128, 128>}, {pipeline_mode = #tpu.pipeline_mode<synchronous>, transform_indices = @transform_2, window_bounds = array<i64: 4, 128, 128>}, {pipeline_mode = #tpu.pipeline_mode<synchronous>, transform_indices = @transform_3, window_bounds = array<i64: 1, 128>}, {transform_indices = @transform_4, window_bounds = array<i64: 1, 16, 16, 128>}]} {
    %c0 = arith.constant 0 : index
    %c0_0 = arith.constant 0 : index
    %c0_1 = arith.constant 0 : index
    %c0_2 = arith.constant 0 : index
    %0 = vector.load %arg1[%c0, %c0_0, %c0_1, %c0_2] : memref<1x16x16x128xf32, #tpu.memory_space<vmem>>, vector<1x16x16x128xf32>
    %1 = vector.shape_cast %0 : vector<1x16x16x128xf32> to vector<16x16x128xf32>
    %2 = vector.shape_cast %1 : vector<16x16x128xf32> to vector<8x2x8x2x128xf32>
    %cst = arith.constant dense<0xFF800000> : vector<8x8x128xf32>
    %3 = vector.multi_reduction <maximumf>, %2, %cst [1, 3] : vector<8x2x8x2x128xf32> to vector<8x8x128xf32>
    %c0_3 = arith.constant 0 : index
    %c0_4 = arith.constant 0 : index
    %4 = vector.load %arg4[%c0_3, %c0_4] : memref<1x128xf32, #tpu.memory_space<vmem>>, vector<1x128xf32>
    %5 = vector.shape_cast %4 : vector<1x128xf32> to vector<1x1x128xf32>
    %6 = vector.shape_cast %5 : vector<1x1x128xf32> to vector<1x1x128xf32>
    %7 = vector.broadcast %6 : vector<1x1x128xf32> to vector<8x8x128xf32>
    %8 = vector.shape_cast %3 : vector<8x8x128xf32> to vector<8x1x8x1x128xf32>
    %9 = vector.shape_cast %8 : vector<8x1x8x1x128xf32> to vector<64x128xf32>
    %c3 = arith.constant 3 : index
    %c0_5 = arith.constant 0 : index
    %c0_6 = arith.constant 0 : index
    %10 = vector.load %arg3[%c3, %c0_5, %c0_6] : memref<4x128x128xf32, #tpu.memory_space<vmem>>, vector<1x128x128xf32>
    %11 = vector.shape_cast %10 : vector<1x128x128xf32> to vector<128x128xf32>
    %cst_7 = arith.constant dense<0.000000e+00> : vector<64x128xf32>
    %12 = tpu.matmul %9, %11, %cst_7 {dimension_numbers = #tpu.dot_dimension_numbers<[1], [0], [0], [1], [0, 0, 1, 1], [], []>} : vector<64x128xf32>, vector<128x128xf32>, vector<64x128xf32> -> vector<64x128xf32>
    %13 = vector.shape_cast %12 : vector<64x128xf32> to vector<8x8x128xf32>
    %14 = arith.addf %7, %13 : vector<8x8x128xf32>
    %15 = vector.shape_cast %3 : vector<8x8x128xf32> to vector<4x2x4x2x128xf32>
    %cst_8 = arith.constant dense<0xFF800000> : vector<4x4x128xf32>
    %16 = vector.multi_reduction <maximumf>, %15, %cst_8 [1, 3] : vector<4x2x4x2x128xf32> to vector<4x4x128xf32>
    %17 = vector.shape_cast %16 : vector<4x4x128xf32> to vector<4x1x4x1x128xf32>
    %18 = vector.shape_cast %17 : vector<4x1x4x1x128xf32> to vector<4x1x4x1x128xf32>
    %19 = vector.broadcast %18 : vector<4x1x4x1x128xf32> to vector<4x2x4x2x128xf32>
    %20 = vector.shape_cast %19 : vector<4x2x4x2x128xf32> to vector<64x128xf32>
    %c2 = arith.constant 2 : index
    %c0_9 = arith.constant 0 : index
    %c0_10 = arith.constant 0 : index
    %21 = vector.load %arg3[%c2, %c0_9, %c0_10] : memref<4x128x128xf32, #tpu.memory_space<vmem>>, vector<1x128x128xf32>
    %22 = vector.shape_cast %21 : vector<1x128x128xf32> to vector<128x128xf32>
    %cst_11 = arith.constant dense<0.000000e+00> : vector<64x128xf32>
    %23 = tpu.matmul %20, %22, %cst_11 {dimension_numbers = #tpu.dot_dimension_numbers<[1], [0], [0], [1], [0, 0, 1, 1], [], []>} : vector<64x128xf32>, vector<128x128xf32>, vector<64x128xf32> -> vector<64x128xf32>
    %24 = vector.shape_cast %23 : vector<64x128xf32> to vector<8x8x128xf32>
    %25 = arith.addf %14, %24 : vector<8x8x128xf32>
    %26 = vector.shape_cast %16 : vector<4x4x128xf32> to vector<2x2x2x2x128xf32>
    %cst_12 = arith.constant dense<0xFF800000> : vector<2x2x128xf32>
    %27 = vector.multi_reduction <maximumf>, %26, %cst_12 [1, 3] : vector<2x2x2x2x128xf32> to vector<2x2x128xf32>
    %28 = vector.shape_cast %27 : vector<2x2x128xf32> to vector<2x1x2x1x128xf32>
    %29 = vector.shape_cast %28 : vector<2x1x2x1x128xf32> to vector<2x1x2x1x128xf32>
    %30 = vector.broadcast %29 : vector<2x1x2x1x128xf32> to vector<2x4x2x4x128xf32>
    %31 = vector.shape_cast %30 : vector<2x4x2x4x128xf32> to vector<64x128xf32>
    %c1 = arith.constant 1 : index
    %c0_13 = arith.constant 0 : index
    %c0_14 = arith.constant 0 : index
    %32 = vector.load %arg3[%c1, %c0_13, %c0_14] : memref<4x128x128xf32, #tpu.memory_space<vmem>>, vector<1x128x128xf32>
    %33 = vector.shape_cast %32 : vector<1x128x128xf32> to vector<128x128xf32>
    %cst_15 = arith.constant dense<0.000000e+00> : vector<64x128xf32>
    %34 = tpu.matmul %31, %33, %cst_15 {dimension_numbers = #tpu.dot_dimension_numbers<[1], [0], [0], [1], [0, 0, 1, 1], [], []>} : vector<64x128xf32>, vector<128x128xf32>, vector<64x128xf32> -> vector<64x128xf32>
    %35 = vector.shape_cast %34 : vector<64x128xf32> to vector<8x8x128xf32>
    %36 = arith.addf %25, %35 : vector<8x8x128xf32>
    %37 = vector.shape_cast %27 : vector<2x2x128xf32> to vector<1x2x1x2x128xf32>
    %cst_16 = arith.constant dense<0xFF800000> : vector<1x1x128xf32>
    %38 = vector.multi_reduction <maximumf>, %37, %cst_16 [1, 3] : vector<1x2x1x2x128xf32> to vector<1x1x128xf32>
    %39 = vector.shape_cast %38 : vector<1x1x128xf32> to vector<1x1x1x1x128xf32>
    %40 = vector.shape_cast %39 : vector<1x1x1x1x128xf32> to vector<1x1x1x1x128xf32>
    %41 = vector.broadcast %40 : vector<1x1x1x1x128xf32> to vector<1x8x1x8x128xf32>
    %42 = vector.shape_cast %41 : vector<1x8x1x8x128xf32> to vector<64x128xf32>
    %c0_17 = arith.constant 0 : index
    %c0_18 = arith.constant 0 : index
    %c0_19 = arith.constant 0 : index
    %43 = vector.load %arg3[%c0_17, %c0_18, %c0_19] : memref<4x128x128xf32, #tpu.memory_space<vmem>>, vector<1x128x128xf32>
    %44 = vector.shape_cast %43 : vector<1x128x128xf32> to vector<128x128xf32>
    %cst_20 = arith.constant dense<0.000000e+00> : vector<64x128xf32>
    %45 = tpu.matmul %42, %44, %cst_20 {dimension_numbers = #tpu.dot_dimension_numbers<[1], [0], [0], [1], [0, 0, 1, 1], [], []>} : vector<64x128xf32>, vector<128x128xf32>, vector<64x128xf32> -> vector<64x128xf32>
    %46 = vector.shape_cast %45 : vector<64x128xf32> to vector<8x8x128xf32>
    %47 = arith.addf %36, %46 : vector<8x8x128xf32>
    %48 = vector.shape_cast %1 : vector<16x16x128xf32> to vector<256x128xf32>
    %c0_21 = arith.constant 0 : index
    %c0_22 = arith.constant 0 : index
    %49 = vector.load %arg2[%c0_21, %c0_22] : memref<128x128xf32, #tpu.memory_space<vmem>>, vector<128x128xf32>
    %cst_23 = arith.constant dense<0.000000e+00> : vector<256x128xf32>
    %50 = tpu.matmul %48, %49, %cst_23 {dimension_numbers = #tpu.dot_dimension_numbers<[1], [0], [0], [1], [0, 0, 1, 1], [], []>} : vector<256x128xf32>, vector<128x128xf32>, vector<256x128xf32> -> vector<256x128xf32>
    %51 = vector.shape_cast %50 : vector<256x128xf32> to vector<16x16x128xf32>
    %52 = vector.shape_cast %47 : vector<8x8x128xf32> to vector<8x1x8x1x128xf32>
    %53 = vector.shape_cast %52 : vector<8x1x8x1x128xf32> to vector<8x1x8x1x128xf32>
    %54 = vector.broadcast %53 : vector<8x1x8x1x128xf32> to vector<8x2x8x2x128xf32>
    %55 = vector.shape_cast %54 : vector<8x2x8x2x128xf32> to vector<16x16x128xf32>
    %56 = arith.addf %51, %55 : vector<16x16x128xf32>
    %c0_24 = arith.constant 0 : index
    %c0_25 = arith.constant 0 : index
    %c0_26 = arith.constant 0 : index
    %c0_27 = arith.constant 0 : index
    %57 = vector.load %arg5[%c0_24, %c0_25, %c0_26, %c0_27] : memref<1x16x16x128xf32, #tpu.memory_space<vmem>>, vector<1x16x16x128xf32>
    %58 = vector.shape_cast %57 : vector<1x16x16x128xf32> to vector<16x16x128xf32>
    %59 = vector.shape_cast %56 : vector<16x16x128xf32> to vector<1x16x16x128xf32>
    tpu.vector_store %arg5[%c0_24, %c0_25, %c0_26, %c0_27], %59 {strides = array<i32>} : memref<1x16x16x128xf32, #tpu.memory_space<vmem>>, vector<1x16x16x128xf32>,
    return
  }
  func.func @transform_0(%arg0: i32) -> (i32, i32, i32, i32) {
    %c0_i32 = arith.constant 0 : i32
    %c0_i32_0 = arith.constant 0 : i32
    %c0_i32_1 = arith.constant 0 : i32
    %c0_i32_2 = arith.constant 0 : i32
    return %arg0, %c0_i32, %c0_i32_0, %c0_i32_1 : i32, i32, i32, i32
  }
  func.func @transform_1(%arg0: i32) -> (i32, i32) {
    %c0_i32 = arith.constant 0 : i32
    %c0_i32_0 = arith.constant 0 : i32
    %c0_i32_1 = arith.constant 0 : i32
    return %c0_i32, %c0_i32_0 : i32, i32
  }
  func.func @transform_2(%arg0: i32) -> (i32, i32, i32) {
    %c0_i32 = arith.constant 0 : i32
    %c0_i32_0 = arith.constant 0 : i32
    %c0_i32_1 = arith.constant 0 : i32
    %c0_i32_2 = arith.constant 0 : i32
    return %c0_i32, %c0_i32_0, %c0_i32_1 : i32, i32, i32
  }
  func.func @transform_3(%arg0: i32) -> (i32, i32) {
    %c0_i32 = arith.constant 0 : i32
    %c0_i32_0 = arith.constant 0 : i32
    %c0_i32_1 = arith.constant 0 : i32
    return %c0_i32, %c0_i32_0 : i32, i32
  }
  func.func @transform_4(%arg0: i32) -> (i32, i32, i32, i32) {
    %c0_i32 = arith.constant 0 : i32
    %c0_i32_0 = arith.constant 0 : i32
    %c0_i32_1 = arith.constant 0 : i32
    %c0_i32_2 = arith.constant 0 : i32
    return %arg0, %c0_i32, %c0_i32_0, %c0_i32_1 : i32, i32, i32, i32
  }
}

</mosaic_0001>

<bundles_post_ra>
// kernel: tpu_custom_call.1
= control target key start
LH: loop header
LB: loop body
LE: loop exit
PB: predicated region body
PF: predicated region fallthrough
CT: control target
= control target key end

     0   :  { %9 = vsyncpa [#allocation3], 0  ;;  %s3723_s0 = inlined_call_operand.hbm [shape: f32[2,16,16,128], index: 0, kind: input, shape index: {}]   ;;  %s3724_s1 = inlined_call_operand.hbm [shape: f32[128,128], index: 1, kind: input, shape index: {}]   ;;  %s3725_s2 = inlined_call_operand.hbm [shape: f32[4,128,128], index: 2, kind: input, shape index: {}]   ;;  %s3726_s3 = inlined_call_operand.vmem [shape: f32[1,128], index: 3, kind: input, shape index: {}]   ;;  %s3727_s4 = inlined_call_operand.hbm [shape: f32[2,16,16,128], index: 4, kind: output, shape index: {}]  }
   0x1   :  { %11 = vsyncpa [#allocation3 + $0x1], 0 }
   0x2   :  { %12 = vsyncpa [#allocation6], 0 }
   0x3   :  { %13 = vsyncpa [#allocation4], 0 }
   0x4   :  { %15 = vsyncpa [#allocation4 + $0x1], 0  ;;  %s2624_s15 = smov 0   ;;  %s2626_s16 = smov 0  }
   0x5   :  { %s2628_s17 = smov 0   ;;  %s2630_s18 = smov 0  }
   0x6 LB: > { %s2645_s19 = sadd.s32 4294967295, %s2591_s18   ;;  %s2291_s20 = sadd.s32 4294967294, %s2591_s18   ;;  %s2591_s18 = sphi %s2630_s18, %s3753_s18   ;;  %s2587_s17 = sphi %s2628_s17, %s3752_s17   ;;  %s2583_s16 = sphi %s2626_s16, %s3751_s16   ;;  %s2579_s15 = sphi %s2624_s15, %s3750_s15  }
   0x7   : > { %p41_p0 = scmp.ne.s32.totalorder %s2583_s16, %s2579_s15  ;;  %p42_p1 = scmp.eq.s32.totalorder %s2645_s19, 0 }
   0x8   : > { %p128_p2 = scmp.eq.s32.totalorder %s2645_s19, 1  ;;  %p134_p3 = scmp.eq.s32.totalorder %s2291_s20, 1 }
   0x9   : > { %p2654_p4 = por %p42_p1, %p41_p0  ;;  %p2292_p5 = scmp.ge.s32.totalorder %s2591_s18, 1 }
   0xa   : > { %p2659_p6 = por %p134_p3, %p41_p0  ;;  %p141_p7 = scmp.lt.s32.totalorder %s2591_s18, 3 }
   0xb   : > { %s152_s25 = sshll.u32 %s3724_s1, 4  ;;  %s2593_s27 = smov [#allocation5]   ;;  %s153_s25 = int_to_ptr.hbm [resolvable:$true] %s152_s25 }
   0xc   : > { %p2667_p8 = pnand %p2292_p5, %p141_p7  ;;  %s154_s28 = sshll.u32 %s2593_s27, 4  ;;  %s155_s28 = int_to_ptr.vmem [resolvable:$true] %s154_s28 }
   0xd   : > { %s166_s5 = sshll.u32 %s3725_s2, 4  ;;  %s2594_s6 = smov 128   ;;  %s167_s5 = int_to_ptr.hbm [resolvable:$true] %s166_s5 }
   0xe   : > { %p2339_p9 = pneg %p2667_p8  ;;  %s2595_s7 = smov 8  }
   0xf   : > { %s2596_s8 = smov [#allocation7]   ;;  %s2686_s10 = sadd.s32 1, %s2591_s18  }
  0x10   : > { %p2340_p10 = pnand %p2339_p9, %p42_p1  ;;  %s168_s9 = sshll.u32 %s2596_s8, 4  ;;  %s169_s9 = int_to_ptr.vmem [resolvable:$true] %s168_s9 }
  0x11   : > { %s28_s11 = sadd.s32 1, %s2587_s17  ;;  %s25_s12 = ssub.s32 %s2591_s18, %s2686_s10 }
  0x12   : > { %2342 = dma.hbm_to_vmem [thread:$0]  (!%p2340_p10), %s153_s25, 2048, %s155_s28, [#allocation6], %s2594_s6, %s2594_s6, %s2595_s7  }
  0x13   : > { %2345 = dma.hbm_to_vmem [thread:$0]  (!%p2340_p10), %s167_s5, 8192, %s169_s9, [#allocation6], %s2594_s6, %s2594_s6, %s2595_s7  }
  0x14   : > { %p35_p12 = scmp.ne.s32.totalorder %s2587_s17, %s2583_s16  ;;  %p26_p13 = scmp.eq.s32.totalorder %s25_s12, 0 }
  0x15   : > { %p36_p0 = scmp.eq.s32.totalorder %s2591_s18, 0  ;;  %p2356_p5 = scmp.lt.s32.totalorder %s2591_s18, 2 }
  0x16   : > { %p2696_p3 = por %p128_p2, %p35_p12  ;;  %s185_s20 = sand.u32 1, %s2587_s17  }
  0x17   : > { %s2702_s14 = scalar_select %p26_p13, %s2587_s17, %s28_s11  }
  0x18   : > { %p37_p7 = por %p36_p0, %p35_p12  ;;  %s2296_s23 = sshll.u32 %s185_s20, 8 }
  0x19   : > { %s2309_s24 = sshll.u32 %s2591_s18, 8  ;;  %s189_s29 = scalar_lea.vmem [#allocation2], %s2296_s23 }
  0x1a   : > { %s194_s28 = scalar_lea.hbm %s3723_s0, %s2309_s24  ;;  %s197_s30 = sshll.u32 %s189_s29, 4  ;;  %s198_s30 = int_to_ptr.vmem [resolvable:$true] %s197_s30 }
  0x1b   : > { %s195_s5 = sshll.u32 %s194_s28, 4  ;;  %p2709_p2 = pnand %p2356_p5, %p37_p7  ;;  %s196_s5 = int_to_ptr.hbm [resolvable:$true] %s195_s5 }
  0x1c   : > { %s186_s9 = scalar_lea.sflag [#allocation3], %s185_s20  ;;  %s2491_s11 = sshra.s32 %s196_s5, 4  ;;  %s2492_s11 = int_to_ptr.hbm [resolvable:$true] %s2491_s11 }
  0x1d   : > { %s2493_s12 = scalar_lea.hbm %s2492_s11, 256  ;;  %p2495_p10 = pneg %p2709_p2 }
  0x1e   : > { %p2494_p9 = scmp.ne.s32.totalorder %s2492_s11, %s2493_s12  ;;  %s2498_s25 = scalar_lea.hbm %s3723_s0, 512 }
  0x1f   : > { %p2499_p0 = scmp.lt.s32.totalorder %s2492_s11, %s3723_s0  ;;  %p2500_p5 = scmp.lt.s32.totalorder %s2498_s25, %s2493_s12 }
  0x20   : > { %p2496_p12 = pnand %p2495_p10, %p2494_p9 }
  0x21   : > { %p2501_p7 = por %p2500_p5, %p2499_p0 }
  0x22   : > { %p2497_p13 = pneg %p2496_p12 }
  0x24   : > { %p2502_p11 = pnand %p2501_p7, %p2497_p13 }
  0x26   : > { %2505 = shalt.err (!%p2502_p11)
}
  0x27   : > { %2349 = dma.hbm_to_vmem [thread:$0]  (!%p2709_p2), %s196_s5, 4096, %s198_s30, %s186_s9, %s2594_s6, %s2594_s6, %s2595_s7  }
  0x28   : > { %209 = sbr.rel (%p2667_p8) target bundleno = 662 (0x296), region = 36  ;;  %s2729_s20 = sand.u32 (!%p2667_p8), 1, %s2583_s16  }
  0x29   : > { %s2300_s29 = sshll.u32 (!%p2667_p8), %s2729_s20, 8  ;;  %s212_s11 = scalar_lea.sflag (!%p2667_p8), [#allocation3], %s2729_s20 }
  0x2a   : > { %s2735_s12 = scalar_lea.vmem (!%p2667_p8), [#allocation2], %s2300_s29 }
  0x2d   : > { %2566 = dma.done.wait (%p2654_p4), %s212_s11, 4096  }
  0x2e   : > { %2568 = vsyncadd (%p2654_p4), %s212_s11, 4294963200 }
  0x2f   : > { %2570 = dma.done.wait (%p42_p1), [#allocation6], 10240  }
  0x30   : > { %2572 = vsyncadd (%p42_p1), [#allocation6], 4294957056  ;;  %v1104_v0 = vld [vmem:[#allocation7 + $0x1f8] sm:$0xff]  ;;  %v1103_v1 = vld [vmem:[#allocation7 + $0x1f0] sm:$0xff]  ;;  %vm507_vm0 = vcmask 1041408   ;;  %vm1169_vm1 = vcmask 1041409  }
  0x31   : > { %1240 = vmatpush.msra.mxu1 %v1104_v0  ;;  %v1102_v2 = vld [vmem:[#allocation7 + $0x1e8] sm:$0xff]  ;;  %v1101_v3 = vld [vmem:[#allocation7 + $0x1e0] sm:$0xff]  ;;  %v1100_v4 = vld [vmem:[#allocation7 + $0x1d8] sm:$0xff]  ;;  %vm1171_vm2 = vcmask 1042434   ;;  %vm1173_vm3 = vcmask 1043459   ;;  %vm1175_vm4 = vcmask 1044484  }
  0x32   : > { %v251_v5 = vld [vmem:[%s2735_s12] sm:$0xff]  ;;  %v2747_v6 = vld [vmem:[%s2735_s12 + $0x8] sm:$0xff]  ;;  %v253_v7 = vld [vmem:[%s2735_s12 + $0x10] sm:$0xff]  ;;  %vm1177_vm5 = vcmask 1045509   ;;  %vm1179_vm6 = vcmask 1046534   ;;  %vm1181_vm7 = vcmask 1047559  }
  0x33   : > { %1241 = vmatpush.msra.mxu1 %v1103_v1  ;;  %v2751_v8 = vld [vmem:[%s2735_s12 + $0x18] sm:$0xff]  ;;  %v315_v9 = vrot.slane %v251_v5, 2  ;;  %v316_v10 = vrot.slane %v251_v5, 4  ;;  %v317_v11 = vrot.slane %v251_v5, 6  ;;  %v318_v12 = vrot.slane %v2747_v6, 2  ;;  %v1501_v18 = vld [vmem:[#allocation7 + $0xf0] sm:$0xff] }
  0x34   : > { %v319_v13 = vrot.slane %v2747_v6, 4  ;;  %v320_v14 = vrot.slane %v2747_v6, 6  ;;  %v321_v15 = vrot.slane %v253_v7, 2  ;;  %v322_v16 = vrot.slane %v253_v7, 4  ;;  %v1502_v17 = vld [vmem:[#allocation7 + $0xf8] sm:$0xff]  ;;  %v1099_v19 = vld [vmem:[#allocation7 + $0x1d0] sm:$0xff] }
  0x35   : > { %1242 = vmatpush.msra.mxu1 %v1102_v2  ;;  %v323_v20 = vrot.slane %v253_v7, 6  ;;  %v324_v21 = vrot.slane %v2751_v8, 2  ;;  %v325_v22 = vrot.slane %v2751_v8, 4  ;;  %v326_v23 = vrot.slane %v2751_v8, 6  ;;  %1546 = vmatpush.msra.mxu3 %v1502_v17  ;;  %v1500_v28 = vld [vmem:[#allocation7 + $0xe8] sm:$0xff]  ;;  %v1499_v38 = vld [vmem:[#allocation7 + $0xe0] sm:$0xff] }
  0x36   : > { %v508_v24 = vsel %vm507_vm0, %v251_v5, -inf  ;;  %v509_v25 = vsel %vm507_vm0, %v253_v7, -inf  ;;  %v517_v26 = vsel %vm507_vm0, %v315_v9, -inf  ;;  %v518_v27 = vsel %vm507_vm0, %v321_v15, -inf  ;;  %v1098_v29 = vld [vmem:[#allocation7 + $0x1c8] sm:$0xff]  ;;  %v1097_v39 = vld [vmem:[#allocation7 + $0x1c0] sm:$0xff] }
  0x37   : > { %1243 = vmatpush.msra.mxu1 %v1101_v3  ;;  %v510_v30 = vmax.f32 %v508_v24, %v509_v25  ;;  %v519_v31 = vmax.f32 %v517_v26, %v518_v27  ;;  %v526_v32 = vsel %vm507_vm0, %v316_v10, -inf  ;;  %v527_v33 = vsel %vm507_vm0, %v322_v16, -inf  ;;  %1547 = vmatpush.msra.mxu3 %v1501_v18  ;;  %v1096_v48 = vld [vmem:[#allocation7 + $0x1b8] sm:$0xff]  ;;  %v1095_v57 = vld [vmem:[#allocation7 + $0x1b0] sm:$0xff]  ;;  %v1094_v2 = vld [vmem:[#allocation7 + $0x1a8] sm:$0xff]  ;;  %s3612_s6 = scalar_lea.vmem [#allocation8], %s2300_s29 }
  0x38   : > { %v528_v34 = vmax.f32 %v526_v32, %v527_v33  ;;  %v535_v35 = vsel %vm507_vm0, %v317_v11, -inf  ;;  %v536_v36 = vsel %vm507_vm0, %v323_v20, -inf  ;;  %v544_v37 = vsel %vm507_vm0, %v2747_v6, -inf  ;;  %s2310_s7 = sshll.u32 %s2645_s19, 8  ;;  %s2196_s9 = sshll.u32 %s3612_s6, 4  ;;  %s2197_s9 = int_to_ptr.vmem [resolvable:$true] %s2196_s9 }
  0x39   : > { %1244 = vmatpush.msra.mxu1 %v1100_v4  ;;  %v511_v40 = vrot.slane %v510_v30, 4  ;;  %v520_v41 = vrot.slane %v519_v31, 4  ;;  %v537_v42 = vmax.f32 %v535_v35, %v536_v36  ;;  %v545_v43 = vsel %vm507_vm0, %v2751_v8, -inf  ;;  %1548 = vmatpush.msra.mxu3 %v1500_v28  ;;  %s2195_s8 = scalar_lea.hbm %s3727_s4, %s2310_s7  ;;  %s2184_s23 = scalar_lea.sflag [#allocation4], %s2729_s20 }
  0x3a   : > { %v529_v44 = vrot.slane %v528_v34, 4  ;;  %v546_v45 = vmax.f32 %v544_v37, %v545_v43  ;;  %v553_v46 = vsel %vm507_vm0, %v318_v12, -inf  ;;  %v554_v47 = vsel %vm507_vm0, %v324_v21, -inf  ;;  %v1092_v21 = vld [vmem:[#allocation7 + $0x198] sm:$0xff]  ;;  %v2806_v43 = vld [vmem:[%s2735_s12 + $0x28] sm:$0xff]  ;;  %s2198_s24 = sshll.u32 %s2195_s8, 4  ;;  %s2199_s24 = int_to_ptr.hbm [resolvable:$true] %s2198_s24 }
  0x3b   : > { %1245 = vmatpush.msra.mxu1 %v1099_v19  ;;  %v512_v49 = vmax.f32 %v510_v30, %v511_v40  ;;  %v521_v50 = vmax.f32 %v519_v31, %v520_v41  ;;  %v538_v51 = vrot.slane %v537_v42, 4  ;;  %v555_v52 = vmax.f32 %v553_v46, %v554_v47  ;;  %1549 = vmatpush.msra.mxu3 %v1499_v38  ;;  %s2535_s25 = sshra.s32 %s2199_s24, 4  ;;  %s2541_s29 = scalar_lea.hbm %s3727_s4, 512  ;;  %s2536_s25 = int_to_ptr.hbm [resolvable:$true] %s2535_s25 }
  0x3c   : > { %v530_v53 = vmax.f32 %v528_v34, %v529_v44  ;;  %v547_v54 = vrot.slane %v546_v45, 4  ;;  %v562_v55 = vsel %vm507_vm0, %v319_v13, -inf  ;;  %v563_v56 = vsel %vm507_vm0, %v325_v22, -inf  ;;  %v1093_v13 = vld [vmem:[#allocation7 + $0x1a0] sm:$0xff]  ;;  %s2537_s19 = scalar_lea.hbm %s2536_s25, 256  ;;  %p2542_p11 = scmp.lt.s32.totalorder %s2536_s25, %s3727_s4 }
  0x3d   : > { %1246 = vmatpush.msra.mxu1 %v1098_v29  ;;  %v513_v58 = vrot.slane %v512_v49, 2  ;;  %v522_v59 = vrot.slane %v521_v50, 2  ;;  %v539_v60 = vmax.f32 %v537_v42, %v538_v51  ;;  %v556_v61 = vrot.slane %v555_v52, 4  ;;  %v1091_v29 = vld [vmem:[#allocation7 + $0x190] sm:$0xff]  ;;  %v255_v34 = vld [vmem:[%s2735_s12 + $0x20] sm:$0xff]  ;;  %p2538_p1 = scmp.ne.s32.totalorder %s2536_s25, %s2537_s19  ;;  %p2543_p2 = scmp.lt.s32.totalorder %s2541_s29, %s2537_s19 }
  0x3e   : > { %v531_v62 = vrot.slane %v530_v53, 2  ;;  %v548_v63 = vmax.f32 %v546_v45, %v547_v54  ;;  %v564_v0 = vmax.f32 %v562_v55, %v563_v56  ;;  %v571_v1 = vsel %vm507_vm0, %v320_v14, -inf }
  0x3f   : > { %1247 = vmatpush.msra.mxu1 %v1097_v39  ;;  %v514_v3 = vmax.f32 %v512_v49, %v513_v58  ;;  %v523_v4 = vmax.f32 %v521_v50, %v522_v59  ;;  %v540_v5 = vrot.slane %v539_v60, 2  ;;  %v557_v7 = vmax.f32 %v555_v52, %v556_v61  ;;  %v1090_v39 = vld [vmem:[#allocation7 + $0x188] sm:$0xff]  ;;  %v1089_v50 = vld [vmem:[#allocation7 + $0x180] sm:$0xff]  ;;  %p2539_p4 = pnand %p2538_p1, %p2696_p3  ;;  %p2544_p9 = por %p2543_p2, %p2542_p11 }
  0x40   : > { %v532_v9 = vmax.f32 %v530_v53, %v531_v62  ;;  %v549_v10 = vrot.slane %v548_v63, 2  ;;  %v565_v11 = vrot.slane %v564_v0, 4  ;;  %v572_v12 = vsel %vm507_vm0, %v326_v23, -inf  ;;  %v2816_v53 = vld [vmem:[%s2735_s12 + $0x38] sm:$0xff] }
  0x41   : > { %1248 = vmatpush.msra.mxu1 %v1096_v48  ;;  %v515_v15 = vrot.slane %v514_v3, 1  ;;  %v524_v16 = vrot.slane %v523_v4, 1  ;;  %v541_v6 = vmax.f32 %v539_v60, %v540_v5  ;;  %v558_v17 = vrot.slane %v557_v7, 2  ;;  %v257_v48 = vld [vmem:[%s2735_s12 + $0x30] sm:$0xff]  ;;  %p2540_p8 = pneg %p2539_p4 }
  0x42   : > { %v533_v14 = vrot.slane %v532_v9, 1  ;;  %v550_v18 = vmax.f32 %v548_v63, %v549_v10  ;;  %v566_v19 = vmax.f32 %v564_v0, %v565_v11  ;;  %v573_v20 = vmax.f32 %v571_v1, %v572_v12 }
  0x43   : > { %1249 = vmatpush.msra.mxu1 %v1095_v57  ;;  %v2781_v22 = vmax.f32 %v514_v3, %v515_v15  ;;  %v2783_v24 = vmax.f32 %v523_v4, %v524_v16  ;;  %v542_v8 = vrot.slane %v541_v6, 1  ;;  %v559_v25 = vmax.f32 %v557_v7, %v558_v17  ;;  %p2545_p10 = pnand %p2544_p9, %p2540_p8 }
  0x44   : > { %v2785_v23 = vmax.f32 %v532_v9, %v533_v14  ;;  %v551_v26 = vrot.slane %v550_v18, 1  ;;  %v567_v27 = vrot.slane %v566_v19, 2  ;;  %v574_v28 = vrot.slane %v573_v20, 4 }
  0x45   : > { %1250 = vmatpush.msra.mxu1 %v1094_v2  ;;  %v2787_v30 = vmax.f32 %v541_v6, %v542_v8  ;;  %v560_v31 = vrot.slane %v559_v25, 1  ;;  %v1170_v32 = vsel %vm1169_vm1, %v2783_v24, %v2781_v22  ;;  %v1289_v33 = vmax.f32 %v2781_v22, %v2783_v24  ;;  %v2867_v24 = vld [vmem:[%s2735_s12 + $0x48] sm:$0xff] }
  0x46   : > { %v2795_v35 = vmax.f32 %v550_v18, %v551_v26  ;;  %v568_v36 = vmax.f32 %v566_v19, %v567_v27  ;;  %v575_v37 = vmax.f32 %v573_v20, %v574_v28  ;;  %v1172_v38 = vsel %vm1171_vm2, %v2785_v23, %v1170_v32  ;;  %v1498_v32 = vld [vmem:[#allocation7 + $0xd8] sm:$0xff] }
  0x47   : > { %1251 = vmatpush.msra.mxu1 %v1093_v13  ;;  %v2799_v40 = vmax.f32 %v559_v25, %v560_v31  ;;  %v1174_v41 = vsel %vm1173_vm3, %v2787_v30, %v1172_v38  ;;  %v1292_v42 = vmax.f32 %v2785_v23, %v2787_v30  ;;  %v327_v44 = vrot.slane %v255_v34, 2  ;;  %1550 = vmatpush.msra.mxu3 %v1498_v32  ;;  %v261_v23 = vld [vmem:[%s2735_s12 + $0x50] sm:$0xff] }
  0x48   : > { %v569_v45 = vrot.slane %v568_v36, 1  ;;  %v576_v46 = vrot.slane %v575_v37, 2  ;;  %v1176_v47 = vsel %vm1175_vm4, %v2795_v35, %v1174_v41  ;;  %v328_v49 = vrot.slane %v255_v34, 4 }
  0x49   : > { %1252 = vmatpush.msra.mxu1 %v1092_v21  ;;  %v1178_v51 = vsel %vm1177_vm5, %v2799_v40, %v1176_v47  ;;  %v1295_v52 = vmax.f32 %v2795_v35, %v2799_v40  ;;  %v329_v54 = vrot.slane %v255_v34, 6  ;;  %v330_v55 = vrot.slane %v2806_v43, 2  ;;  %v2885_v35 = vld [vmem:[%s2735_s12 + $0x58] sm:$0xff] }
  0x4a   : > { %v2819_v56 = vmax.f32 %v568_v36, %v569_v45  ;;  %v577_v57 = vmax.f32 %v575_v37, %v576_v46  ;;  %v331_v58 = vrot.slane %v2806_v43, 4  ;;  %v332_v59 = vrot.slane %v2806_v43, 6  ;;  %v1496_v46 = vld [vmem:[#allocation7 + $0xc8] sm:$0xff] }
  0x4b   : > { %1253 = vmatpush.msra.mxu1 %v1091_v29  ;;  %v333_v60 = vrot.slane %v257_v48, 2  ;;  %v334_v61 = vrot.slane %v257_v48, 4  ;;  %v335_v62 = vrot.slane %v257_v48, 6  ;;  %v336_v63 = vrot.slane %v2816_v53, 2 }
  0x4c   : > { %v578_v0 = vrot.slane %v577_v57, 1  ;;  %v1180_v1 = vsel %vm1179_vm6, %v2819_v56, %v1178_v51  ;;  %v337_v2 = vrot.slane %v2816_v53, 4  ;;  %v338_v3 = vrot.slane %v2816_v53, 6 }
  0x4d   : > { %1254 = vmatpush.msra.mxu1 %v1090_v39  ;;  %v580_v4 = vsel %vm507_vm0, %v255_v34, -inf  ;;  %v581_v5 = vsel %vm507_vm0, %v257_v48, -inf  ;;  %v589_v7 = vsel %vm507_vm0, %v327_v44, -inf  ;;  %v590_v9 = vsel %vm507_vm0, %v333_v60, -inf  ;;  %v1497_v34 = vld [vmem:[#allocation7 + $0xd0] sm:$0xff] }
  0x4e   : > { %v2832_v10 = vmax.f32 %v577_v57, %v578_v0  ;;  %v582_v11 = vmax.f32 %v580_v4, %v581_v5  ;;  %v591_v12 = vmax.f32 %v589_v7, %v590_v9  ;;  %v598_v13 = vsel %vm507_vm0, %v328_v49, -inf  ;;  %1551 = vmatpush.msra.mxu3 %v1497_v34  ;;  %v1495_v57 = vld [vmem:[#allocation7 + $0xc0] sm:$0xff] }
  0x4f   : > { %1255 = vmatpush.msra.mxu1 %v1089_v50  ;;  %v599_v15 = vsel %vm507_vm0, %v334_v61, -inf  ;;  %v607_v16 = vsel %vm507_vm0, %v329_v54, -inf  ;;  %v608_v6 = vsel %vm507_vm0, %v335_v62, -inf  ;;  %v616_v17 = vsel %vm507_vm0, %v2806_v43, -inf }
  0x50   : > { %v1182_v14 = vsel %vm1181_vm7, %v2832_v10, %v1180_v1  ;;  %v1298_v18 = vmax.f32 %v2819_v56, %v2832_v10  ;;  %v583_v19 = vrot.slane %v582_v11, 4  ;;  %v592_v20 = vrot.slane %v591_v12, 4  ;;  %1552 = vmatpush.msra.mxu3 %v1496_v46 }
  0x51   : > { %1256 = vmatmul.f32.vlgmr.msra.gmra.mxu1 %v1182_v14  ;;  %v600_v21 = vmax.f32 %v598_v13, %v599_v15  ;;  %v609_v8 = vmax.f32 %v607_v16, %v608_v6  ;;  %v617_v25 = vsel %vm507_vm0, %v2816_v53, -inf  ;;  %v625_v26 = vsel %vm507_vm0, %v330_v55, -inf  ;;  %v2853_v14 = vld [vmem:[%s2735_s12 + $0x40] sm:$0xff] }
  0x52   : > { %v584_v27 = vmax.f32 %v582_v11, %v583_v19  ;;  %v593_v28 = vmax.f32 %v591_v12, %v592_v20  ;;  %v618_v29 = vmax.f32 %v616_v17, %v617_v25  ;;  %v626_v31 = vsel %vm507_vm0, %v336_v63, -inf  ;;  %1553 = vmatpush.msra.mxu3 %v1495_v57  ;;  %v1677_v57 = vld [vmem:[#allocation5 + $0x70] sm:$0xff] }
  0x53   : > { %v601_v36 = vrot.slane %v600_v21, 4  ;;  %v610_v37 = vrot.slane %v609_v8, 4  ;;  %v627_v38 = vmax.f32 %v625_v26, %v626_v31  ;;  %v634_v39 = vsel %vm507_vm0, %v331_v58, -inf }
  0x54   : > { %v585_v41 = vrot.slane %v584_v27, 2  ;;  %v594_v43 = vrot.slane %v593_v28, 2  ;;  %v619_v44 = vrot.slane %v618_v29, 4  ;;  %v635_v45 = vsel %vm507_vm0, %v337_v2, -inf }
  0x55   : > { %v602_v47 = vmax.f32 %v600_v21, %v601_v36  ;;  %v611_v48 = vmax.f32 %v609_v8, %v610_v37  ;;  %v628_v49 = vrot.slane %v627_v38, 4  ;;  %v636_v50 = vmax.f32 %v634_v39, %v635_v45 }
  0x56   : > { %v586_v51 = vmax.f32 %v584_v27, %v585_v41  ;;  %v595_v53 = vmax.f32 %v593_v28, %v594_v43  ;;  %v620_v54 = vmax.f32 %v618_v29, %v619_v44  ;;  %v643_v55 = vsel %vm507_vm0, %v332_v59, -inf }
  0x57   : > { %v603_v60 = vrot.slane %v602_v47, 2  ;;  %v612_v58 = vrot.slane %v611_v48, 2  ;;  %v629_v61 = vmax.f32 %v627_v38, %v628_v49  ;;  %v637_v62 = vrot.slane %v636_v50, 4 }
  0x58   : > { %v587_v63 = vrot.slane %v586_v51, 1  ;;  %v596_v0 = vrot.slane %v595_v53, 1  ;;  %v621_v1 = vrot.slane %v620_v54, 2  ;;  %v644_v2 = vsel %vm507_vm0, %v338_v3, -inf }
  0x59   : > { %v604_v4 = vmax.f32 %v602_v47, %v603_v60  ;;  %v613_v5 = vmax.f32 %v611_v48, %v612_v58  ;;  %v630_v7 = vrot.slane %v629_v61, 2  ;;  %v638_v9 = vmax.f32 %v636_v50, %v637_v62  ;;  %v1493_v48 = vld [vmem:[#allocation7 + $0xb0] sm:$0xff] }
  0x5a   : > { %v588_v11 = vmax.f32 %v586_v51, %v587_v63  ;;  %v597_v12 = vmax.f32 %v595_v53, %v596_v0  ;;  %v622_v59 = vmax.f32 %v620_v54, %v621_v1  ;;  %v645_v13 = vmax.f32 %v643_v55, %v644_v2  ;;  %v1492_v54 = vld [vmem:[#allocation7 + $0xa8] sm:$0xff]  ;;  %v1678_v55 = vld [vmem:[#allocation5 + $0x78] sm:$0xff] }
  0x5b   : > { %v605_v15 = vrot.slane %v604_v4, 1  ;;  %v614_v16 = vrot.slane %v613_v5, 1  ;;  %v631_v6 = vmax.f32 %v629_v61, %v630_v7  ;;  %v639_v17 = vrot.slane %v638_v9, 2  ;;  %1679 = vmatpush.msra.mxu0 %v1678_v55  ;;  %2311 = vmatpush.msra.mxu2 %v1678_v55 }
  0x5c   : > { %v623_v19 = vrot.slane %v622_v59, 1  ;;  %v646_v20 = vrot.slane %v645_v13, 4  ;;  %v1183_v3 = vsel %vm1169_vm1, %v597_v12, %v588_v11  ;;  %v1290_v21 = vmax.f32 %v1289_v33, %v588_v11 }
  0x5d   : > { %v606_v8 = vmax.f32 %v604_v4, %v605_v15  ;;  %v615_v25 = vmax.f32 %v613_v5, %v614_v16  ;;  %v632_v26 = vrot.slane %v631_v6, 1  ;;  %v640_v27 = vmax.f32 %v638_v9, %v639_v17  ;;  %v1491_v5 = vld [vmem:[#allocation7 + $0xa0] sm:$0xff]  ;;  %1680 = vmatpush.msra.mxu0 %v1677_v57  ;;  %2312 = vmatpush.msra.mxu2 %v1677_v57 }
  0x5e   : > { %v624_v28 = vmax.f32 %v622_v59, %v623_v19  ;;  %v647_v29 = vmax.f32 %v645_v13, %v646_v20  ;;  %v2859_v31 = vmax.f32 %v1290_v21, %v597_v12  ;;  %v339_v32 = vrot.slane %v2853_v14, 2 }
  0x5f   : > { %v633_v34 = vmax.f32 %v631_v6, %v632_v26  ;;  %v641_v36 = vrot.slane %v640_v27, 1  ;;  %v1184_v37 = vsel %vm1171_vm2, %v606_v8, %v1183_v3  ;;  %v1293_v22 = vmax.f32 %v1292_v42, %v606_v8 }
  0x60   : > { %v648_v33 = vrot.slane %v647_v29, 2  ;;  %v1185_v38 = vsel %vm1173_vm3, %v615_v25, %v1184_v37  ;;  %v1296_v39 = vmax.f32 %v1295_v52, %v624_v28  ;;  %1370 = vst [vmem:[#allocation1] ss:$4 sm:$0xff] %v2859_v31  ;;  %v340_v41 = vrot.slane %v2853_v14, 4  ;;  %v1494_v52 = vld [vmem:[#allocation7 + $0xb8] sm:$0xff] }
  0x61   : > { %v642_v43 = vmax.f32 %v640_v27, %v641_v36  ;;  %v1186_v44 = vsel %vm1175_vm4, %v624_v28, %v1185_v38  ;;  %v2876_v45 = vmax.f32 %v1293_v22, %v615_v25  ;;  %1378 = vst [vmem:[#allocation1 + $0x20] ss:$4 sm:$0xff] %v2859_v31  ;;  %v341_v30 = vrot.slane %v2853_v14, 6  ;;  %1554 = vmatpush.msra.mxu3 %v1494_v52 }
  0x62   : > { %v649_v42 = vmax.f32 %v647_v29, %v648_v33  ;;  %v1187_v46 = vsel %vm1177_vm5, %v633_v34, %v1186_v44  ;;  %v2882_v47 = vmax.f32 %v1296_v39, %v633_v34  ;;  %v342_v40 = vrot.slane %v2867_v24, 2 }
  0x63   : > { %v1188_v49 = vsel %vm1179_vm6, %v642_v43, %v1187_v46  ;;  %v1299_v50 = vmax.f32 %v1298_v18, %v642_v43  ;;  %1372 = vst [vmem:[#allocation1 + $0x1] ss:$4 sm:$0xff] %v2876_v45  ;;  %v1474_v51 = vmax.f32 %v2859_v31, %v2876_v45  ;;  %v343_v53 = vrot.slane %v2867_v24, 4  ;;  %1555 = vmatpush.msra.mxu3 %v1493_v48 }
  0x64   : > { %v650_v60 = vrot.slane %v649_v42, 1  ;;  %1374 = vst [vmem:[#allocation1 + $0x2] ss:$4 sm:$0xff] %v2882_v47  ;;  %v344_v58 = vrot.slane %v2867_v24, 6  ;;  %v345_v61 = vrot.slane %v261_v23, 2  ;;  %v346_v62 = vrot.slane %v261_v23, 4 }
  0x65   : > { %1380 = vst [vmem:[#allocation1 + $0x21] ss:$4 sm:$0xff] %v2876_v45  ;;  %v347_v56 = vrot.slane %v261_v23, 6  ;;  %v348_v10 = vrot.slane %v2885_v35, 2  ;;  %v349_v18 = vrot.slane %v2885_v35, 4  ;;  %v350_v63 = vrot.slane %v2885_v35, 6  ;;  %1556 = vmatpush.msra.mxu3 %v1492_v54 }
  0x66   : > { %v651_v0 = vmax.f32 %v649_v42, %v650_v60  ;;  %1382 = vst [vmem:[#allocation1 + $0x22] ss:$4 sm:$0xff] %v2882_v47  ;;  %v652_v1 = vsel %vm507_vm0, %v2853_v14, -inf  ;;  %v653_v2 = vsel %vm507_vm0, %v261_v23, -inf  ;;  %v661_v4 = vsel %vm507_vm0, %v339_v32, -inf  ;;  %v3027_v45 = vld [vmem:[%s2735_s12 + $0x80] sm:$0xff] }
  0x67   : > { %v654_v7 = vmax.f32 %v652_v1, %v653_v2  ;;  %v662_v9 = vsel %vm507_vm0, %v345_v61, -inf  ;;  %v670_v11 = vsel %vm507_vm0, %v340_v41, -inf  ;;  %v671_v12 = vsel %vm507_vm0, %v346_v62, -inf  ;;  %1557 = vmatpush.msra.mxu3 %v1491_v5  ;;  %v263_v5 = vld [vmem:[%s2735_s12 + $0x60] sm:$0xff] }
  0x68   : > { %v1189_v59 = vsel %vm1181_vm7, %v651_v0, %v1188_v49  ;;  %v2911_v13 = vmax.f32 %v1299_v50, %v651_v0  ;;  %v663_v15 = vmax.f32 %v661_v4, %v662_v9  ;;  %v672_v16 = vmax.f32 %v670_v11, %v671_v12 }
  0x69   : > { %1259 = vmatmul.f32.gmra.mxu1 %v1189_v59  ;;  %v655_v6 = vrot.slane %v654_v7, 4  ;;  %v679_v17 = vsel %vm507_vm0, %v341_v30, -inf  ;;  %v680_v14 = vsel %vm507_vm0, %v347_v56, -inf  ;;  %v688_v19 = vsel %vm507_vm0, %v2867_v24, -inf }
  0x6a   : > { %1376 = vst [vmem:[#allocation1 + $0x3] ss:$4 sm:$0xff] %v2911_v13  ;;  %v1477_v20 = vmax.f32 %v2882_v47, %v2911_v13  ;;  %v664_v3 = vrot.slane %v663_v15, 4  ;;  %v673_v21 = vrot.slane %v672_v16, 4  ;;  %v681_v8 = vmax.f32 %v679_v17, %v680_v14  ;;  %v2944_v17 = vld [vmem:[%s2735_s12 + $0x68] sm:$0xff] }
  0x6b   : > { %1384 = vst [vmem:[#allocation1 + $0x23] ss:$4 sm:$0xff] %v2911_v13  ;;  %v656_v25 = vmax.f32 %v654_v7, %v655_v6  ;;  %v689_v26 = vsel %vm507_vm0, %v2885_v35, -inf  ;;  %v697_v27 = vsel %vm507_vm0, %v342_v40, -inf  ;;  %v698_v28 = vsel %vm507_vm0, %v348_v10, -inf }
  0x6c   : > { %v665_v29 = vmax.f32 %v663_v15, %v664_v3  ;;  %v674_v32 = vmax.f32 %v672_v16, %v673_v21  ;;  %v682_v34 = vrot.slane %v681_v8, 4  ;;  %v690_v36 = vmax.f32 %v688_v19, %v689_v26 }
  0x6d   : > { %v657_v37 = vrot.slane %v656_v25, 2  ;;  %v699_v22 = vmax.f32 %v697_v27, %v698_v28  ;;  %v706_v24 = vsel %vm507_vm0, %v343_v53, -inf  ;;  %v707_v33 = vsel %vm507_vm0, %v349_v18, -inf  ;;  %v265_v27 = vld [vmem:[%s2735_s12 + $0x70] sm:$0xff] }
  0x6e   : > { %v666_v38 = vrot.slane %v665_v29, 2  ;;  %v675_v39 = vrot.slane %v674_v32, 2  ;;  %v683_v41 = vmax.f32 %v681_v8, %v682_v34  ;;  %v691_v43 = vrot.slane %v690_v36, 4 }
  0x6f   : > { %v658_v44 = vmax.f32 %v656_v25, %v657_v37  ;;  %v700_v23 = vrot.slane %v699_v22, 4  ;;  %v708_v30 = vmax.f32 %v706_v24, %v707_v33  ;;  %v715_v42 = vsel %vm507_vm0, %v344_v58, -inf }
  0x70   : > { %v667_v46 = vmax.f32 %v665_v29, %v666_v38  ;;  %v676_v35 = vmax.f32 %v674_v32, %v675_v39  ;;  %v684_v40 = vrot.slane %v683_v41, 2  ;;  %v692_v52 = vmax.f32 %v690_v36, %v691_v43  ;;  %v2960_v32 = vld [vmem:[%s2735_s12 + $0x78] sm:$0xff] }
  0x71   : > { %v659_v48 = vrot.slane %v658_v44, 1  ;;  %v701_v49 = vmax.f32 %v699_v22, %v700_v23  ;;  %v709_v50 = vrot.slane %v708_v30, 4  ;;  %v716_v53 = vsel %vm507_vm0, %v350_v63, -inf }
  0x72   : > { %v668_v54 = vrot.slane %v667_v46, 1  ;;  %v677_v55 = vrot.slane %v676_v35, 1  ;;  %v685_v57 = vmax.f32 %v683_v41, %v684_v40  ;;  %v693_v60 = vrot.slane %v692_v52, 2 }
  0x73   : > { %v2929_v61 = vmax.f32 %v658_v44, %v659_v48  ;;  %v702_v62 = vrot.slane %v701_v49, 2  ;;  %v710_v56 = vmax.f32 %v708_v30, %v709_v50  ;;  %v717_v10 = vmax.f32 %v715_v42, %v716_v53 }
  0x74   : > { %v2931_v58 = vmax.f32 %v667_v46, %v668_v54  ;;  %v2933_v18 = vmax.f32 %v676_v35, %v677_v55  ;;  %v686_v0 = vrot.slane %v685_v57, 1  ;;  %v694_v1 = vmax.f32 %v692_v52, %v693_v60 }
  0x75   : > { %v703_v2 = vmax.f32 %v701_v49, %v702_v62  ;;  %v711_v4 = vrot.slane %v710_v56, 2  ;;  %v718_v63 = vrot.slane %v717_v10, 4  ;;  %v351_v12 = vrot.slane %v263_v5, 2 }
  0x76   : > { %v2936_v7 = vmax.f32 %v685_v57, %v686_v0  ;;  %v695_v9 = vrot.slane %v694_v1, 1  ;;  %v1190_v11 = vsel %vm1169_vm1, %v2931_v58, %v2929_v61  ;;  %v1301_v3 = vmax.f32 %v2929_v61, %v2931_v58 }
  0x77   : > { %v704_v59 = vrot.slane %v703_v2, 1  ;;  %v712_v15 = vmax.f32 %v710_v56, %v711_v4  ;;  %v719_v16 = vmax.f32 %v717_v10, %v718_v63  ;;  %v1191_v6 = vsel %vm1171_vm2, %v2933_v18, %v1190_v11 }
  0x78   : > { %v2946_v14 = vmax.f32 %v694_v1, %v695_v9  ;;  %v1192_v19 = vsel %vm1173_vm3, %v2936_v7, %v1191_v6  ;;  %v1304_v21 = vmax.f32 %v2933_v18, %v2936_v7  ;;  %v352_v28 = vrot.slane %v263_v5, 4  ;;  %v1489_v6 = vld [vmem:[#allocation7 + $0x90] sm:$0xff] }
  0x79   : > { %v2954_v8 = vmax.f32 %v703_v2, %v704_v59  ;;  %v713_v25 = vrot.slane %v712_v15, 1  ;;  %v720_v26 = vrot.slane %v719_v16, 2  ;;  %v353_v34 = vrot.slane %v263_v5, 6 }
  0x7a   : > { %v1193_v29 = vsel %vm1175_vm4, %v2946_v14, %v1192_v19  ;;  %v354_v36 = vrot.slane %v2944_v17, 2  ;;  %v355_v37 = vrot.slane %v2944_v17, 4  ;;  %v356_v38 = vrot.slane %v2944_v17, 6 }
  0x7b   : > { %v2964_v22 = vmax.f32 %v712_v15, %v713_v25  ;;  %v721_v24 = vmax.f32 %v719_v16, %v720_v26  ;;  %v1194_v33 = vsel %vm1177_vm5, %v2954_v8, %v1193_v29  ;;  %v1307_v39 = vmax.f32 %v2946_v14, %v2954_v8  ;;  %v1490_v15 = vld [vmem:[#allocation7 + $0x98] sm:$0xff]  ;;  %v1676_v16 = vld [vmem:[#allocation5 + $0x68] sm:$0xff] }
  0x7c   : > { %v357_v41 = vrot.slane %v265_v27, 2  ;;  %v358_v43 = vrot.slane %v265_v27, 4  ;;  %v359_v44 = vrot.slane %v265_v27, 6  ;;  %v360_v42 = vrot.slane %v2960_v32, 2  ;;  %1558 = vmatpush.msra.mxu3 %v1490_v15  ;;  %1681 = vmatpush.msra.mxu0 %v1676_v16 }
  0x7d   : > { %v722_v23 = vrot.slane %v721_v24, 1  ;;  %v1195_v30 = vsel %vm1179_vm6, %v2964_v22, %v1194_v33  ;;  %v361_v46 = vrot.slane %v2960_v32, 4  ;;  %v724_v35 = vsel %vm507_vm0, %v263_v5, -inf  ;;  %2313 = vmatpush.msra.mxu2 %v1676_v16  ;;  %v3002_v16 = vld.sshfl [vmem:[#allocation1] sm:$0xff pattern:$0x73625140] }
  0x7e   : > { %v725_v40 = vsel %vm507_vm0, %v265_v27, -inf  ;;  %v733_v52 = vsel %vm507_vm0, %v351_v12, -inf  ;;  %v734_v48 = vsel %vm507_vm0, %v357_v41, -inf  ;;  %v742_v54 = vsel %vm507_vm0, %v352_v28, -inf  ;;  %v1675_v27 = vld [vmem:[#allocation5 + $0x60] sm:$0xff]  ;;  %1559 = vmatpush.msra.mxu3 %v1489_v6 }
  0x7f   : > { %v2979_v49 = vmax.f32 %v721_v24, %v722_v23  ;;  %v726_v50 = vmax.f32 %v724_v35, %v725_v40  ;;  %v735_v53 = vmax.f32 %v733_v52, %v734_v48  ;;  %v743_v55 = vsel %vm507_vm0, %v358_v43, -inf  ;;  %v1674_v24 = vld [vmem:[#allocation5 + $0x58] sm:$0xff]  ;;  %1682 = vmatpush.msra.mxu0 %v1675_v27  ;;  %v1487_v35 = vld [vmem:[#allocation7 + $0x80] sm:$0xff]  ;;  %v1673_v40 = vld [vmem:[#allocation5 + $0x50] sm:$0xff]  ;;  %2314 = vmatpush.msra.mxu2 %v1675_v27 }
  0x80   : > { %v751_v57 = vsel %vm507_vm0, %v353_v34, -inf  ;;  %v752_v60 = vsel %vm507_vm0, %v359_v44, -inf  ;;  %v760_v62 = vsel %vm507_vm0, %v2944_v17, -inf  ;;  %v362_v10 = vrot.slane %v2960_v32, 6 }
  0x81   : > { %v1196_v56 = vsel %vm1181_vm7, %v2979_v49, %v1195_v30  ;;  %v727_v0 = vrot.slane %v726_v50, 4  ;;  %v736_v1 = vrot.slane %v735_v53, 4  ;;  %v744_v2 = vmax.f32 %v742_v54, %v743_v55  ;;  %1683 = vmatpush.msra.mxu0 %v1674_v24  ;;  %2315 = vmatpush.msra.mxu2 %v1674_v24 }
  0x82   : > { %1262 = vmatmul.f32.gmra.mxu1 %v1196_v56  ;;  %v753_v4 = vmax.f32 %v751_v57, %v752_v60  ;;  %v761_v63 = vsel %vm507_vm0, %v2960_v32, -inf  ;;  %v769_v5 = vsel %vm507_vm0, %v354_v36, -inf  ;;  %v770_v59 = vsel %vm507_vm0, %v360_v42, -inf  ;;  %v1488_v36 = vld [vmem:[#allocation7 + $0x88] sm:$0xff] }
  0x83   : > { %v728_v9 = vmax.f32 %v726_v50, %v727_v0  ;;  %v737_v11 = vmax.f32 %v735_v53, %v736_v1  ;;  %v762_v12 = vmax.f32 %v760_v62, %v761_v63  ;;  %v745_v17 = vrot.slane %v744_v2, 4  ;;  %1560 = vmatpush.msra.mxu3 %v1488_v36  ;;  %1684 = vmatpush.msra.mxu0 %v1673_v40 }
  0x84   : > { %v754_v19 = vrot.slane %v753_v4, 4  ;;  %v771_v25 = vmax.f32 %v769_v5, %v770_v59  ;;  %v778_v26 = vsel %vm507_vm0, %v355_v37, -inf  ;;  %v779_v34 = vsel %vm507_vm0, %v361_v46, -inf  ;;  %2316 = vmatpush.msra.mxu2 %v1673_v40 }
  0x85   : > { %v729_v28 = vrot.slane %v728_v9, 2  ;;  %v738_v29 = vrot.slane %v737_v11, 2  ;;  %v763_v32 = vrot.slane %v762_v12, 4  ;;  %v746_v33 = vmax.f32 %v744_v2, %v745_v17  ;;  %1561 = vmatpush.msra.mxu3 %v1487_v35 }
  0x86   : > { %v755_v41 = vmax.f32 %v753_v4, %v754_v19  ;;  %v772_v43 = vrot.slane %v771_v25, 4  ;;  %v780_v44 = vmax.f32 %v778_v26, %v779_v34  ;;  %v787_v42 = vsel %vm507_vm0, %v356_v38, -inf  ;;  %v3004_v26 = vld.sshfl [vmem:[#allocation1 + $0x20] sm:$0xff pattern:$0x73625140] }
  0x87   : > { %v730_v23 = vmax.f32 %v728_v9, %v729_v28  ;;  %v739_v30 = vmax.f32 %v737_v11, %v738_v29  ;;  %v764_v37 = vmax.f32 %v762_v12, %v763_v32  ;;  %v747_v52 = vrot.slane %v746_v33, 2 }
  0x88   : > { %v756_v48 = vrot.slane %v755_v41, 2  ;;  %v773_v46 = vmax.f32 %v771_v25, %v772_v43  ;;  %v781_v50 = vrot.slane %v780_v44, 4  ;;  %v788_v57 = vsel %vm507_vm0, %v362_v10, -inf }
  0x89   : > { %v731_v53 = vrot.slane %v730_v23, 1  ;;  %v740_v54 = vrot.slane %v739_v30, 1  ;;  %v765_v55 = vrot.slane %v764_v37, 2  ;;  %v748_v60 = vmax.f32 %v746_v33, %v747_v52  ;;  %v3045_v52 = vld [vmem:[%s2735_s12 + $0xa0] sm:$0xff] }
  0x8a   : > { %v757_v62 = vmax.f32 %v755_v41, %v756_v48  ;;  %v774_v56 = vrot.slane %v773_v46, 2  ;;  %v782_v0 = vmax.f32 %v780_v44, %v781_v50  ;;  %v789_v4 = vmax.f32 %v787_v42, %v788_v57  ;;  %v3048_v48 = vld [vmem:[%s2735_s12 + $0xa8] sm:$0xff] }
  0x8b   : > { %v732_v38 = vmax.f32 %v730_v23, %v731_v53  ;;  %v741_v1 = vmax.f32 %v739_v30, %v740_v54  ;;  %v766_v2 = vmax.f32 %v764_v37, %v765_v55  ;;  %v749_v63 = vrot.slane %v748_v60, 1  ;;  %v3034_v30 = vld [vmem:[%s2735_s12 + $0x90] sm:$0xff]  ;;  %v3037_v37 = vld [vmem:[%s2735_s12 + $0x98] sm:$0xff]  ;;  %v3059_v55 = vld [vmem:[%s2735_s12 + $0xc0] sm:$0xff] }
  0x8c   : > { %v758_v5 = vrot.slane %v757_v62, 1  ;;  %v775_v9 = vmax.f32 %v773_v46, %v774_v56  ;;  %v783_v11 = vrot.slane %v782_v0, 2  ;;  %v790_v59 = vrot.slane %v789_v4, 4  ;;  %v3051_v46 = vld [vmem:[%s2735_s12 + $0xb0] sm:$0xff]  ;;  %v3056_v54 = vld [vmem:[%s2735_s12 + $0xb8] sm:$0xff] }
  0x8d   : > { %v767_v12 = vrot.slane %v766_v2, 1  ;;  %v1197_v10 = vsel %vm1169_vm1, %v741_v1, %v732_v38  ;;  %v1302_v15 = vmax.f32 %v1301_v3, %v732_v38  ;;  %v750_v6 = vmax.f32 %v748_v60, %v749_v63  ;;  %v3068_v38 = vld [vmem:[%s2735_s12 + $0xc8] sm:$0xff] }
  0x8e   : > { %v759_v17 = vmax.f32 %v757_v62, %v758_v5  ;;  %v776_v19 = vrot.slane %v775_v9, 1  ;;  %v784_v25 = vmax.f32 %v782_v0, %v783_v11  ;;  %v1310_v27 = vmax.f32 %v2964_v22, %v2979_v49 }
  0x8f   : > { %v768_v28 = vmax.f32 %v766_v2, %v767_v12  ;;  %v791_v29 = vmax.f32 %v789_v4, %v790_v59  ;;  %v1303_v32 = vmax.f32 %v1302_v15, %v741_v1  ;;  %v1198_v24 = vsel %vm1171_vm2, %v750_v6, %v1197_v10  ;;  %v3078_v12 = vld [vmem:[%s2735_s12 + $0xd0] sm:$0xff] }
  0x90   : > { %v777_v34 = vmax.f32 %v775_v9, %v776_v19  ;;  %v785_v36 = vrot.slane %v784_v25, 1  ;;  %v1305_v61 = vmax.f32 %v1304_v21, %v750_v6  ;;  %v1199_v3 = vsel %vm1173_vm3, %v759_v17, %v1198_v24 }
  0x91   : > { %v792_v58 = vrot.slane %v791_v29, 2  ;;  %v1308_v33 = vmax.f32 %v1307_v39, %v768_v28  ;;  %1387 = vst [vmem:[#allocation1] ss:$4 sm:$0xff] %v1303_v32  ;;  %v1475_v22 = vmax.f32 %v1474_v51, %v1303_v32  ;;  %v1200_v41 = vsel %vm1175_vm4, %v768_v28, %v1199_v3  ;;  %v3030_v51 = vld [vmem:[%s2735_s12 + $0x88] sm:$0xff] }
  0x92   : > { %v786_v49 = vmax.f32 %v784_v25, %v785_v36  ;;  %v1306_v43 = vmax.f32 %v1305_v61, %v759_v17  ;;  %1391 = vst [vmem:[#allocation1 + $0x20] ss:$4 sm:$0xff] %v1303_v32  ;;  %v1201_v7 = vsel %vm1177_vm5, %v777_v34, %v1200_v41  ;;  %v363_v47 = vrot.slane %v3027_v45, 2  ;;  %v3085_v17 = vld [vmem:[%s2735_s12 + $0xd8] sm:$0xff] }
  0x93   : > { %v793_v18 = vmax.f32 %v791_v29, %v792_v58  ;;  %v1309_v21 = vmax.f32 %v1308_v33, %v777_v34  ;;  %v364_v13 = vrot.slane %v3027_v45, 4  ;;  %v366_v42 = vrot.slane %v3030_v51, 2  ;;  %v3100_v33 = vld [vmem:[%s2735_s12 + $0xe0] sm:$0xff] }
  0x94   : > { %1388 = vst [vmem:[#allocation1 + $0x1] ss:$4 sm:$0xff] %v1306_v43  ;;  %v3021_v14 = vmax.f32 %v1475_v22, %v1306_v43  ;;  %v1311_v39 = vmax.f32 %v1310_v27, %v786_v49  ;;  %v1202_v44 = vsel %vm1179_vm6, %v786_v49, %v1201_v7  ;;  %v367_v50 = vrot.slane %v3030_v51, 4 }
  0x95   : > { %v794_v8 = vrot.slane %v793_v18, 1  ;;  %1389 = vst [vmem:[#allocation1 + $0x2] ss:$4 sm:$0xff] %v1309_v21  ;;  %v1478_v31 = vmax.f32 %v1477_v20, %v1309_v21  ;;  %v365_v20 = vrot.slane %v3027_v45, 6  ;;  %v368_v53 = vrot.slane %v3030_v51, 6 }
  0x96   : > { %1392 = vst [vmem:[#allocation1 + $0x21] ss:$4 sm:$0xff] %v1306_v43  ;;  %v369_v57 = vrot.slane %v3034_v30, 2  ;;  %v370_v60 = vrot.slane %v3034_v30, 4  ;;  %v371_v62 = vrot.slane %v3034_v30, 6  ;;  %v372_v56 = vrot.slane %v3037_v37, 2 }
  0x97   : > { %v795_v23 = vmax.f32 %v793_v18, %v794_v8  ;;  %1393 = vst [vmem:[#allocation1 + $0x22] ss:$4 sm:$0xff] %v1309_v21  ;;  %v373_v1 = vrot.slane %v3037_v37, 4  ;;  %v374_v2 = vrot.slane %v3037_v37, 6  ;;  %v375_v4 = vrot.slane %v3045_v52, 2 }
  0x98   : > { %v376_v63 = vrot.slane %v3045_v52, 4  ;;  %v377_v5 = vrot.slane %v3045_v52, 6  ;;  %v378_v9 = vrot.slane %v3048_v48, 2  ;;  %v379_v11 = vrot.slane %v3048_v48, 4 }
  0x99   : > { %v1203_v35 = vsel %vm1181_vm7, %v795_v23, %v1202_v44  ;;  %v1312_v40 = vmax.f32 %v1311_v39, %v795_v23  ;;  %v380_v59 = vrot.slane %v3048_v48, 6  ;;  %v381_v10 = vrot.slane %v3051_v46, 2 }
  0x9a   : > { %1265 = vmatmul.f32.gmra.mxu1 %v1203_v35  ;;  %v382_v15 = vrot.slane %v3051_v46, 4  ;;  %v383_v6 = vrot.slane %v3051_v46, 6  ;;  %v384_v19 = vrot.slane %v3056_v54, 2  ;;  %v385_v25 = vrot.slane %v3056_v54, 4 }
  0x9b   : > { %1390 = vst [vmem:[#allocation1 + $0x3] ss:$4 sm:$0xff] %v1312_v40  ;;  %v3065_v0 = vmax.f32 %v1478_v31, %v1312_v40  ;;  %v386_v27 = vrot.slane %v3056_v54, 6  ;;  %v387_v28 = vrot.slane %v3059_v55, 2  ;;  %v388_v29 = vrot.slane %v3059_v55, 4 }
  0x9c   : > { %1394 = vst [vmem:[#allocation1 + $0x23] ss:$4 sm:$0xff] %v1312_v40  ;;  %v389_v32 = vrot.slane %v3059_v55, 6  ;;  %v390_v34 = vrot.slane %v3068_v38, 2  ;;  %v393_v61 = vrot.slane %v3078_v12, 2  ;;  %v394_v58 = vrot.slane %v3078_v12, 4 }
  0x9d   : > { %v395_v3 = vrot.slane %v3078_v12, 6  ;;  %v396_v22 = vrot.slane %v3085_v17, 2  ;;  %v796_v43 = vsel %vm507_vm0, %v3027_v45, -inf  ;;  %v797_v7 = vsel %vm507_vm0, %v3034_v30, -inf }
  0x9e   : > { %v805_v21 = vsel %vm507_vm0, %v363_v47, -inf  ;;  %v806_v8 = vsel %vm507_vm0, %v369_v57, -inf  ;;  %v798_v39 = vmax.f32 %v796_v43, %v797_v7  ;;  %v814_v44 = vsel %vm507_vm0, %v364_v13, -inf }
  0x9f   : > { %v807_v31 = vmax.f32 %v805_v21, %v806_v8  ;;  %v815_v23 = vsel %vm507_vm0, %v370_v60, -inf  ;;  %v823_v40 = vsel %vm507_vm0, %v365_v20, -inf  ;;  %v824_v45 = vsel %vm507_vm0, %v371_v62, -inf }
  0xa0   : > { %v816_v35 = vmax.f32 %v814_v44, %v815_v23  ;;  %v832_v18 = vsel %vm507_vm0, %v3030_v51, -inf  ;;  %v799_v41 = vrot.slane %v798_v39, 4  ;;  %v825_v47 = vmax.f32 %v823_v40, %v824_v45 }
  0xa1   : > { %v808_v30 = vrot.slane %v807_v31, 4  ;;  %v833_v57 = vsel %vm507_vm0, %v3037_v37, -inf  ;;  %v841_v13 = vsel %vm507_vm0, %v366_v42, -inf  ;;  %v842_v20 = vsel %vm507_vm0, %v372_v56, -inf }
  0xa2   : > { %v817_v43 = vrot.slane %v816_v35, 4  ;;  %v834_v7 = vmax.f32 %v832_v18, %v833_v57  ;;  %v800_v60 = vmax.f32 %v798_v39, %v799_v41  ;;  %v826_v21 = vrot.slane %v825_v47, 4  ;;  %v3129_v18 = vld [vmem:[%s2735_s12 + $0xe8] sm:$0xff] }
  0xa3   : > { %v809_v62 = vmax.f32 %v807_v31, %v808_v30  ;;  %v843_v8 = vmax.f32 %v841_v13, %v842_v20  ;;  %v850_v40 = vsel %vm507_vm0, %v367_v50, -inf  ;;  %v851_v45 = vsel %vm507_vm0, %v373_v1, -inf }
  0xa4   : > { %v818_v44 = vmax.f32 %v816_v35, %v817_v43  ;;  %v835_v23 = vrot.slane %v834_v7, 4  ;;  %v801_v57 = vrot.slane %v800_v60, 2  ;;  %v827_v42 = vmax.f32 %v825_v47, %v826_v21  ;;  %v3133_v35 = vld [vmem:[%s2735_s12 + $0xf0] sm:$0xff] }
  0xa5   : > { %v810_v24 = vrot.slane %v809_v62, 2  ;;  %v844_v56 = vrot.slane %v843_v8, 4  ;;  %v852_v30 = vmax.f32 %v850_v40, %v851_v45  ;;  %v859_v1 = vsel %vm507_vm0, %v368_v53, -inf }
  0xa6   : > { %v819_v39 = vrot.slane %v818_v44, 2  ;;  %v836_v31 = vmax.f32 %v834_v7, %v835_v23  ;;  %v802_v13 = vmax.f32 %v800_v60, %v801_v57  ;;  %v828_v47 = vrot.slane %v827_v42, 2  ;;  %v3145_v23 = vld [vmem:[%s2735_s12 + $0xf8] sm:$0xff] }
  0xa7   : > { %v853_v21 = vrot.slane %v852_v30, 4  ;;  %v860_v7 = vsel %vm507_vm0, %v374_v2, -inf  ;;  %v811_v50 = vmax.f32 %v809_v62, %v810_v24  ;;  %v845_v60 = vmax.f32 %v843_v8, %v844_v56 }
  0xa8   : > { %v3150_v57 = vmax.f32 %v818_v44, %v819_v39  ;;  %v837_v53 = vrot.slane %v836_v31, 2  ;;  %v861_v20 = vmax.f32 %v859_v1, %v860_v7  ;;  %v803_v41 = vrot.slane %v802_v13, 1 }
  0xa9   : > { %v854_v2 = vmax.f32 %v852_v30, %v853_v21  ;;  %v829_v36 = vmax.f32 %v827_v42, %v828_v47  ;;  %v812_v24 = vrot.slane %v811_v50, 1  ;;  %v846_v62 = vrot.slane %v845_v60, 2 }
  0xaa   : > { %v862_v45 = vrot.slane %v861_v20, 4  ;;  %v868_v8 = vsel %vm507_vm0, %v3045_v52, -inf  ;;  %v869_v44 = vsel %vm507_vm0, %v3051_v46, -inf  ;;  %v821_v56 = vrot.slane %v3150_v57, 1 }
  0xab   : > { %v838_v39 = vmax.f32 %v836_v31, %v837_v53  ;;  %v870_v7 = vmax.f32 %v868_v8, %v869_v44  ;;  %v3161_v30 = vmax.f32 %v802_v13, %v803_v41  ;;  %v855_v21 = vrot.slane %v854_v2, 2 }
  0xac   : > { %v863_v1 = vmax.f32 %v861_v20, %v862_v45  ;;  %v877_v42 = vsel %vm507_vm0, %v375_v4, -inf  ;;  %v878_v47 = vsel %vm507_vm0, %v381_v10, -inf  ;;  %v830_v40 = vrot.slane %v829_v36, 1 }
  0xad   : > { %v871_v49 = vrot.slane %v870_v7, 4  ;;  %v879_v37 = vmax.f32 %v877_v42, %v878_v47  ;;  %v886_v31 = vsel %vm507_vm0, %v376_v63, -inf  ;;  %v887_v41 = vsel %vm507_vm0, %v382_v15, -inf }
  0xae   : > { %v895_v13 = vsel %vm507_vm0, %v377_v5, -inf  ;;  %v896_v4 = vsel %vm507_vm0, %v383_v6, -inf  ;;  %v904_v10 = vsel %vm507_vm0, %v3048_v48, -inf  ;;  %v847_v20 = vmax.f32 %v845_v60, %v846_v62 }
  0xaf   : > { %v864_v45 = vrot.slane %v863_v1, 2  ;;  %v872_v53 = vmax.f32 %v870_v7, %v871_v49  ;;  %v880_v8 = vrot.slane %v879_v37, 4  ;;  %v856_v63 = vmax.f32 %v854_v2, %v855_v21 }
  0xb0   : > { %v888_v44 = vmax.f32 %v886_v31, %v887_v41  ;;  %v897_v42 = vmax.f32 %v895_v13, %v896_v4  ;;  %v905_v15 = vsel %vm507_vm0, %v3056_v54, -inf  ;;  %v913_v46 = vsel %vm507_vm0, %v378_v9, -inf }
  0xb1   : > { %v873_v52 = vrot.slane %v872_v53, 2  ;;  %v881_v47 = vmax.f32 %v879_v37, %v880_v8  ;;  %v906_v5 = vmax.f32 %v904_v10, %v905_v15  ;;  %v914_v49 = vsel %vm507_vm0, %v384_v19, -inf }
  0xb2   : > { %v889_v6 = vrot.slane %v888_v44, 4  ;;  %v898_v43 = vrot.slane %v897_v42, 4  ;;  %v922_v60 = vsel %vm507_vm0, %v379_v11, -inf  ;;  %v865_v2 = vmax.f32 %v863_v1, %v864_v45 }
  0xb3   : > { %v874_v62 = vmax.f32 %v872_v53, %v873_v52  ;;  %v882_v7 = vrot.slane %v881_v47, 2  ;;  %v907_v21 = vrot.slane %v906_v5, 4  ;;  %v915_v41 = vmax.f32 %v913_v46, %v914_v49 }
  0xb4   : > { %v890_v37 = vmax.f32 %v888_v44, %v889_v6  ;;  %v899_v31 = vmax.f32 %v897_v42, %v898_v43  ;;  %v923_v9 = vsel %vm507_vm0, %v385_v25, -inf  ;;  %v3197_v13 = vmax.f32 %v811_v50, %v812_v24 }
  0xb5   : > { %v883_v4 = vmax.f32 %v881_v47, %v882_v7  ;;  %v908_v10 = vmax.f32 %v906_v5, %v907_v21  ;;  %v924_v19 = vmax.f32 %v922_v60, %v923_v9  ;;  %v839_v8 = vrot.slane %v838_v39, 1 }
  0xb6   : > { %v848_v15 = vrot.slane %v847_v20, 1  ;;  %v916_v51 = vrot.slane %v915_v41, 4  ;;  %v931_v11 = vsel %vm507_vm0, %v380_v59, -inf  ;;  %v3203_v1 = vmax.f32 %v3150_v57, %v821_v56 }
  0xb7   : > { %v3205_v43 = vmax.f32 %v829_v36, %v830_v40  ;;  %v857_v45 = vrot.slane %v856_v63, 1  ;;  %v891_v53 = vrot.slane %v890_v37, 2  ;;  %v866_v25 = vrot.slane %v865_v2, 1 }
  0xb8   : > { %v875_v50 = vrot.slane %v874_v62, 1  ;;  %v900_v24 = vrot.slane %v899_v31, 2  ;;  %v932_v44 = vsel %vm507_vm0, %v386_v27, -inf  ;;  %v884_v42 = vrot.slane %v883_v4, 1 }
  0xb9   : > { %v909_v52 = vrot.slane %v908_v10, 2  ;;  %v925_v47 = vrot.slane %v924_v19, 4  ;;  %v933_v48 = vmax.f32 %v931_v11, %v932_v44  ;;  %v3210_v5 = vmax.f32 %v838_v39, %v839_v8 }
  0xba   : > { %v3212_v59 = vmax.f32 %v847_v20, %v848_v15  ;;  %v917_v57 = vmax.f32 %v915_v41, %v916_v51  ;;  %v940_v36 = vsel %vm507_vm0, %v3059_v55, -inf  ;;  %v3216_v40 = vmax.f32 %v856_v63, %v857_v45 }
  0xbb   : > { %v892_v56 = vmax.f32 %v890_v37, %v891_v53  ;;  %v934_v46 = vrot.slane %v933_v48, 4  ;;  %v941_v54 = vsel %vm507_vm0, %v3078_v12, -inf  ;;  %v3220_v27 = vmax.f32 %v865_v2, %v866_v25 }
  0xbc   : > { %v3222_v6 = vmax.f32 %v874_v62, %v875_v50  ;;  %v901_v49 = vmax.f32 %v899_v31, %v900_v24  ;;  %v942_v39 = vmax.f32 %v940_v36, %v941_v54  ;;  %v3224_v60 = vmax.f32 %v883_v4, %v884_v42 }
  0xbd   : > { %v910_v20 = vmax.f32 %v908_v10, %v909_v52  ;;  %v926_v51 = vmax.f32 %v924_v19, %v925_v47  ;;  %v949_v63 = vsel %vm507_vm0, %v387_v28, -inf  ;;  %v918_v7 = vrot.slane %v917_v57, 2 }
  0xbe   : > { %v943_v21 = vrot.slane %v942_v39, 4  ;;  %v950_v37 = vsel %vm507_vm0, %v393_v61, -inf  ;;  %v958_v2 = vsel %vm507_vm0, %v388_v29, -inf  ;;  %v893_v62 = vrot.slane %v892_v56, 1 }
  0xbf   : > { %v935_v31 = vmax.f32 %v933_v48, %v934_v46  ;;  %v951_v41 = vmax.f32 %v949_v63, %v950_v37  ;;  %v959_v9 = vsel %vm507_vm0, %v394_v58, -inf  ;;  %v902_v4 = vrot.slane %v901_v49, 1 }
  0xc0   : > { %v944_v10 = vmax.f32 %v942_v39, %v943_v21  ;;  %v960_v28 = vmax.f32 %v958_v2, %v959_v9  ;;  %v967_v19 = vsel %vm507_vm0, %v389_v32, -inf  ;;  %v911_v8 = vrot.slane %v910_v20, 1 }
  0xc1   : > { %v927_v61 = vrot.slane %v926_v51, 2  ;;  %v952_v15 = vrot.slane %v951_v41, 4  ;;  %v968_v29 = vsel %vm507_vm0, %v395_v3, -inf  ;;  %v919_v11 = vmax.f32 %v917_v57, %v918_v7 }
  0xc2   : > { %v961_v45 = vrot.slane %v960_v28, 4  ;;  %v969_v53 = vmax.f32 %v967_v19, %v968_v29  ;;  %v976_v58 = vsel %vm507_vm0, %v3068_v38, -inf  ;;  %v936_v25 = vrot.slane %v935_v31, 2 }
  0xc3   : > { %v945_v50 = vrot.slane %v944_v10, 2  ;;  %v953_v24 = vmax.f32 %v951_v41, %v952_v15  ;;  %v977_v55 = vsel %vm507_vm0, %v3085_v17, -inf  ;;  %v985_v12 = vsel %vm507_vm0, %v390_v34, -inf }
  0xc4   : > { %v962_v32 = vmax.f32 %v960_v28, %v961_v45  ;;  %v970_v44 = vrot.slane %v969_v53, 4  ;;  %v978_v42 = vmax.f32 %v976_v58, %v977_v55  ;;  %v3251_v3 = vmax.f32 %v892_v56, %v893_v62 }
  0xc5   : > { %v3253_v52 = vmax.f32 %v901_v49, %v902_v4  ;;  %v954_v47 = vrot.slane %v953_v24, 2  ;;  %v986_v48 = vsel %vm507_vm0, %v396_v22, -inf  ;;  %v3733_v54 = vrot.slane %v3068_v38, 4 }
  0xc6   : > { %v963_v57 = vrot.slane %v962_v32, 2  ;;  %v971_v36 = vmax.f32 %v969_v53, %v970_v44  ;;  %v979_v46 = vrot.slane %v978_v42, 4  ;;  %v928_v63 = vmax.f32 %v926_v51, %v927_v61 }
  0xc7   : > { %v994_v39 = vsel %vm507_vm0, %v3733_v54, -inf  ;;  %v987_v7 = vmax.f32 %v985_v12, %v986_v48  ;;  %v3734_v34 = vrot.slane %v3085_v17, 4  ;;  %v3735_v49 = vrot.slane %v3068_v38, 6 }
  0xc8   : > { %v920_v37 = vrot.slane %v919_v11, 1  ;;  %v937_v2 = vmax.f32 %v935_v31, %v936_v25  ;;  %v946_v22 = vmax.f32 %v944_v10, %v945_v50  ;;  %v980_v62 = vmax.f32 %v978_v42, %v979_v46 }
  0xc9   : > { %v995_v56 = vsel %vm507_vm0, %v3734_v34, -inf  ;;  %v1003_v21 = vsel %vm507_vm0, %v3735_v49, -inf  ;;  %v972_v41 = vrot.slane %v971_v36, 2  ;;  %v988_v9 = vrot.slane %v987_v7, 4 }
  0xca   : > { %v996_v4 = vmax.f32 %v994_v39, %v995_v56  ;;  %v3736_v28 = vrot.slane %v3085_v17, 6  ;;  %v3270_v19 = vmax.f32 %v910_v20, %v911_v8  ;;  %v955_v61 = vmax.f32 %v953_v24, %v954_v47 }
  0xcb   : > { %v964_v15 = vmax.f32 %v962_v32, %v963_v57  ;;  %v929_v45 = vrot.slane %v928_v63, 1  ;;  %v981_v38 = vrot.slane %v980_v62, 2  ;;  %v1012_v31 = vsel %vm507_vm0, %v3100_v33, -inf }
  0xcc   : > { %v1004_v51 = vsel %vm507_vm0, %v3736_v28, -inf  ;;  %v997_v53 = vrot.slane %v996_v4, 4  ;;  %v3274_v10 = vmax.f32 %v919_v11, %v920_v37  ;;  %v938_v58 = vrot.slane %v937_v2, 1 }
  0xcd   : > { %v1005_v29 = vmax.f32 %v1003_v21, %v1004_v51  ;;  %v989_v25 = vmax.f32 %v987_v7, %v988_v9  ;;  %v947_v55 = vrot.slane %v946_v22, 1  ;;  %v973_v17 = vmax.f32 %v971_v36, %v972_v41 }
  0xce   : > { %v998_v44 = vmax.f32 %v996_v4, %v997_v53  ;;  %v1013_v20 = vsel %vm507_vm0, %v3133_v35, -inf  ;;  %v956_v8 = vrot.slane %v955_v61, 1  ;;  %v965_v24 = vrot.slane %v964_v15, 1 }
  0xcf   : > { %v1006_v50 = vrot.slane %v1005_v29, 4  ;;  %v1014_v42 = vmax.f32 %v1012_v31, %v1013_v20  ;;  %v982_v12 = vmax.f32 %v980_v62, %v981_v38  ;;  %v3737_v47 = vrot.slane %v3100_v33, 2 }
  0xd0   : > { %v3738_v11 = vrot.slane %v3133_v35, 2  ;;  %v3739_v46 = vrot.slane %v3100_v33, 4  ;;  %v3287_v54 = vmax.f32 %v928_v63, %v929_v45  ;;  %v3289_v39 = vmax.f32 %v937_v2, %v938_v58 }
  0xd1   : > { %v1007_v32 = vmax.f32 %v1005_v29, %v1006_v50  ;;  %v1021_v48 = vsel %vm507_vm0, %v3737_v47, -inf  ;;  %v990_v7 = vrot.slane %v989_v25, 2  ;;  %v999_v34 = vrot.slane %v998_v44, 2 }
  0xd2   : > { %v1022_v57 = vsel %vm507_vm0, %v3738_v11, -inf  ;;  %v1030_v36 = vsel %vm507_vm0, %v3739_v46, -inf  ;;  %v3291_v56 = vmax.f32 %v946_v22, %v947_v55  ;;  %v974_v49 = vrot.slane %v973_v17, 1 }
  0xd3   : > { %v1015_v21 = vrot.slane %v1014_v42, 4  ;;  %v3740_v37 = vrot.slane %v3133_v35, 4  ;;  %v1008_v41 = vrot.slane %v1007_v32, 2  ;;  %v1023_v9 = vmax.f32 %v1021_v48, %v1022_v57 }
  0xd4   : > { %v3741_v28 = vrot.slane %v3100_v33, 6  ;;  %v3299_v51 = vmax.f32 %v955_v61, %v956_v8  ;;  %v3301_v2 = vmax.f32 %v964_v15, %v965_v24  ;;  %v983_v29 = vrot.slane %v982_v12, 1 }
  0xd5   : > { %v1031_v62 = vsel %vm507_vm0, %v3740_v37, -inf  ;;  %v3742_v22 = vrot.slane %v3133_v35, 6  ;;  %v991_v38 = vmax.f32 %v989_v25, %v990_v7  ;;  %v1000_v53 = vmax.f32 %v998_v44, %v999_v34 }
  0xd6   : > { %v1032_v4 = vmax.f32 %v1030_v36, %v1031_v62  ;;  %v1039_v63 = vsel %vm507_vm0, %v3741_v28, -inf  ;;  %v1048_v58 = vsel %vm507_vm0, %v3129_v18, -inf  ;;  %v1016_v50 = vmax.f32 %v1014_v42, %v1015_v21 }
  0xd7   : > { %v1040_v45 = vsel %vm507_vm0, %v3742_v22, -inf  ;;  %v1049_v33 = vsel %vm507_vm0, %v3145_v23, -inf  ;;  %v3743_v61 = vrot.slane %v3129_v18, 2  ;;  %v3313_v20 = vmax.f32 %v973_v17, %v974_v49 }
  0xd8   : > { %v1033_v31 = vrot.slane %v1032_v4, 4  ;;  %v1041_v55 = vmax.f32 %v1039_v63, %v1040_v45  ;;  %v1009_v35 = vmax.f32 %v1007_v32, %v1008_v41  ;;  %v1024_v8 = vrot.slane %v1023_v9, 4 }
  0xd9   : > { %v1057_v15 = vsel %vm507_vm0, %v3743_v61, -inf  ;;  %v3315_v25 = vmax.f32 %v982_v12, %v983_v29  ;;  %v1050_v47 = vmax.f32 %v1048_v58, %v1049_v33  ;;  %v3744_v48 = vrot.slane %v3145_v23, 2 }
  0xda   : > { %v1034_v24 = vmax.f32 %v1032_v4, %v1033_v31  ;;  %v1042_v44 = vrot.slane %v1041_v55, 4  ;;  %v992_v11 = vrot.slane %v991_v38, 1  ;;  %v1001_v57 = vrot.slane %v1000_v53, 1 }
  0xdb   : > { %v1058_v42 = vsel %vm507_vm0, %v3744_v48, -inf  ;;  %v3745_v36 = vrot.slane %v3129_v18, 4  ;;  %v1017_v17 = vrot.slane %v1016_v50, 2  ;;  %v1051_v34 = vrot.slane %v1050_v47, 4 }
  0xdc   : > { %v1059_v46 = vmax.f32 %v1057_v15, %v1058_v42  ;;  %v3746_v32 = vrot.slane %v3145_v23, 4  ;;  %v3747_v49 = vrot.slane %v3129_v18, 6  ;;  %v1010_v37 = vrot.slane %v1009_v35, 1 }
  0xdd   : > { %v1066_v7 = vsel %vm507_vm0, %v3745_v36, -inf  ;;  %v1025_v62 = vmax.f32 %v1023_v9, %v1024_v8  ;;  %v1035_v41 = vrot.slane %v1034_v24, 2  ;;  %v1043_v28 = vmax.f32 %v1041_v55, %v1042_v44 }
  0xde   : > { %v1067_v12 = vsel %vm507_vm0, %v3746_v32, -inf  ;;  %v1075_v21 = vsel %vm507_vm0, %v3747_v49, -inf  ;;  %v1060_v4 = vrot.slane %v1059_v46, 4  ;;  %v1052_v63 = vmax.f32 %v1050_v47, %v1051_v34  ;;  %v3354_v49 = vld.sshfl [vmem:[#allocation1] sm:$0xff pattern:$0x73625140] }
  0xdf   : > { %v1068_v29 = vmax.f32 %v1066_v7, %v1067_v12  ;;  %v3748_v22 = vrot.slane %v3145_v23, 6  ;;  %v3332_v31 = vmax.f32 %v991_v38, %v992_v11  ;;  %v3334_v58 = vmax.f32 %v1000_v53, %v1001_v57 }
  0xe0   : > { %v1061_v33 = vmax.f32 %v1059_v46, %v1060_v4  ;;  %v1018_v18 = vmax.f32 %v1016_v50, %v1017_v17  ;;  %v1053_v15 = vrot.slane %v1052_v63, 2  ;;  %v1204_v9 = vsel %vm1169_vm1, %v3197_v13, %v3161_v30 }
  0xe1   : > { %v1076_v45 = vsel %vm507_vm0, %v3748_v22, -inf  ;;  %v1069_v48 = vrot.slane %v1068_v29, 4  ;;  %v3339_v55 = vmax.f32 %v1009_v35, %v1010_v37  ;;  %v1026_v8 = vrot.slane %v1025_v62, 2 }
  0xe2   : > { %v1077_v61 = vmax.f32 %v1075_v21, %v1076_v45  ;;  %v1205_v23 = vsel %vm1171_vm2, %v3203_v1, %v1204_v9  ;;  %v1036_v38 = vmax.f32 %v1034_v24, %v1035_v41  ;;  %v1044_v47 = vrot.slane %v1043_v28, 2  ;;  %v3360_v41 = vld.sshfl [vmem:[#allocation1 + $0x20] sm:$0xff pattern:$0x73625140] }
  0xe3   : > { %v1070_v53 = vmax.f32 %v1068_v29, %v1069_v48  ;;  %v1206_v42 = vsel %vm1173_vm3, %v3205_v43, %v1205_v23  ;;  %v1062_v50 = vrot.slane %v1061_v33, 2  ;;  %v1313_v35 = vmax.f32 %v3161_v30, %v3197_v13 }
  0xe4   : > { %v1078_v44 = vrot.slane %v1077_v61, 4  ;;  %v1207_v57 = vsel %vm1175_vm4, %v3210_v5, %v1206_v42  ;;  %v1019_v46 = vrot.slane %v1018_v18, 1  ;;  %v1054_v36 = vmax.f32 %v1052_v63, %v1053_v15 }
  0xe5   : > { %v1071_v7 = vrot.slane %v1070_v53, 2  ;;  %v1208_v17 = vsel %vm1177_vm5, %v3212_v59, %v1207_v57  ;;  %v1027_v24 = vmax.f32 %v1025_v62, %v1026_v8  ;;  %v1314_v12 = vmax.f32 %v1313_v35, %v3222_v6 }
  0xe6   : > { %v1079_v11 = vmax.f32 %v1077_v61, %v1078_v44  ;;  %v1209_v32 = vsel %vm1179_vm6, %v3216_v40, %v1208_v17  ;;  %v1037_v21 = vrot.slane %v1036_v38, 1  ;;  %v1316_v13 = vmax.f32 %v3203_v1, %v3205_v43  ;;  %v1351_v17 = vld [vmem:[#allocation7 + $0x168] sm:$0xff] }
  0xe7   : > { %v1072_v37 = vmax.f32 %v1070_v53, %v1071_v7  ;;  %v1210_v30 = vsel %vm1181_vm7, %v3220_v27, %v1209_v32  ;;  %v1045_v4 = vmax.f32 %v1043_v28, %v1044_v47  ;;  %v1063_v62 = vmax.f32 %v1061_v33, %v1062_v50  ;;  %v1352_v50 = vld [vmem:[#allocation7 + $0x170] sm:$0xff] }
  0xe8   : > { %v1080_v34 = vrot.slane %v1079_v11, 2  ;;  %1268 = vmatmul.f32.gmra.mxu1 %v1210_v30  ;;  %v3363_v63 = vmax.f32 %v1314_v12, %v3224_v60  ;;  %v1319_v29 = vmax.f32 %v3210_v5, %v3212_v59  ;;  %v1055_v22 = vrot.slane %v1054_v36, 1  ;;  %v1669_v30 = vld [vmem:[#allocation5 + $0x30] sm:$0xff] }
  0xe9   : > { %v1317_v61 = vmax.f32 %v1316_v13, %v3251_v3  ;;  %v1322_v15 = vmax.f32 %v3216_v40, %v3220_v27  ;;  %v3370_v48 = vmax.f32 %v1018_v18, %v1019_v46  ;;  %v1028_v1 = vrot.slane %v1027_v24, 1  ;;  %v1353_v40 = vld [vmem:[#allocation7 + $0x178] sm:$0xff]  ;;  %v1672_v27 = vld [vmem:[#allocation5 + $0x48] sm:$0xff] }
  0xea   : > { %v1081_v45 = vmax.f32 %v1079_v11, %v1080_v34  ;;  %v1073_v43 = vrot.slane %v1072_v37, 1  ;;  %v1320_v28 = vmax.f32 %v1319_v29, %v3270_v19  ;;  %1397 = vst [vmem:[#allocation1] ss:$4 sm:$0xff] %v3363_v63  ;;  %v3374_v33 = vmax.f32 %v1036_v38, %v1037_v21  ;;  %1425 = vmatpush.msrb.mxu1 %v1353_v40  ;;  %v1671_v11 = vld [vmem:[#allocation5 + $0x40] sm:$0xff]  ;;  %v1670_v34 = vld [vmem:[#allocation5 + $0x38] sm:$0xff]  ;;  %v1347_v40 = vld [vmem:[#allocation7 + $0x148] sm:$0xff] }
  0xeb   : > { %v3377_v9 = vmax.f32 %v1317_v61, %v3253_v52  ;;  %v1323_v5 = vmax.f32 %v1322_v15, %v3287_v54  ;;  %v1325_v59 = vmax.f32 %v3291_v56, %v3299_v51  ;;  %1401 = vst [vmem:[#allocation1 + $0x20] ss:$4 sm:$0xff] %v3363_v63  ;;  %v1046_v18 = vrot.slane %v1045_v4, 1  ;;  %1685 = vmatpush.msra.mxu0 %v1672_v27  ;;  %v1668_v61 = vld [vmem:[#allocation5 + $0x28] sm:$0xff] }
  0xec   : > { %v1064_v8 = vrot.slane %v1063_v62, 1  ;;  %v3384_v44 = vmax.f32 %v1320_v28, %v3274_v10  ;;  %v1328_v23 = vmax.f32 %v3301_v2, %v3313_v20  ;;  %v3388_v38 = vmax.f32 %v1054_v36, %v1055_v22  ;;  %1426 = vmatpush.msrb.mxu1 %v1352_v50  ;;  %v1349_v22 = vld [vmem:[#allocation7 + $0x158] sm:$0xff]  ;;  %2317 = vmatpush.msra.mxu2 %v1672_v27 }
  0xed   : > { %v1082_v47 = vrot.slane %v1081_v45, 1  ;;  %v3391_v53 = vmax.f32 %v1323_v5, %v3289_v39  ;;  %v1331_v42 = vmax.f32 %v3315_v25, %v3332_v31  ;;  %1398 = vst [vmem:[#allocation1 + $0x1] ss:$4 sm:$0xff] %v3377_v9  ;;  %v3396_v57 = vmax.f32 %v1072_v37, %v1073_v43  ;;  %1686 = vmatpush.msra.mxu0 %v1671_v11  ;;  %v1350_v37 = vld [vmem:[#allocation7 + $0x160] sm:$0xff]  ;;  %v1666_v27 = vld [vmem:[#allocation5 + $0x18] sm:$0xff] }
  0xee   : > { %v1334_v35 = vmax.f32 %v3334_v58, %v3339_v55  ;;  %1399 = vst [vmem:[#allocation1 + $0x2] ss:$4 sm:$0xff] %v3384_v44  ;;  %v1211_v46 = vsel %vm1169_vm1, %v3224_v60, %v3222_v6  ;;  %v3404_v36 = vmax.f32 %v1027_v24, %v1028_v1  ;;  %v1326_v7 = vmax.f32 %v1325_v59, %v3370_v48  ;;  %v1667_v1 = vld [vmem:[#allocation5 + $0x20] sm:$0xff] }
  0xef   : > { %1400 = vst [vmem:[#allocation1 + $0x3] ss:$4 sm:$0xff] %v3391_v53  ;;  %v1212_v32 = vsel %vm1171_vm2, %v3251_v3, %v1211_v46  ;;  %v3410_v12 = vmax.f32 %v1045_v4, %v1046_v18  ;;  %v1329_v21 = vmax.f32 %v1328_v23, %v3374_v33  ;;  %1427 = vmatpush.msrb.mxu1 %v1351_v17  ;;  %v1665_v23 = vld [vmem:[#allocation5 + $0x10] sm:$0xff] }
  0xf0   : > { %1402 = vst [vmem:[#allocation1 + $0x21] ss:$4 sm:$0xff] %v3377_v9  ;;  %v1213_v6 = vsel %vm1173_vm3, %v3253_v52, %v1212_v32  ;;  %v3416_v60 = vmax.f32 %v1063_v62, %v1064_v8  ;;  %v1332_v24 = vmax.f32 %v1331_v42, %v3388_v38  ;;  %v3422_v13 = vmax.f32 %v1081_v45, %v1082_v47  ;;  %v1345_v42 = vld [vmem:[#allocation7 + $0x138] sm:$0xff]  ;;  %v1608_v17 = vld [vmem:[#allocation7 + $0x50] sm:$0xff]  ;;  %v1342_v32 = vld [vmem:[#allocation7 + $0x120] sm:$0xff] }
  0xf1   : > { %1403 = vst [vmem:[#allocation1 + $0x22] ss:$4 sm:$0xff] %v3384_v44  ;;  %v1214_v3 = vsel %vm1175_vm4, %v3270_v19, %v1213_v6  ;;  %v1335_v4 = vmax.f32 %v1334_v35, %v3396_v57  ;;  %1687 = vmatpush.msra.mxu0 %v1670_v34  ;;  %1428 = vmatpush.msrb.mxu1 %v1350_v37  ;;  %v1344_v35 = vld [vmem:[#allocation7 + $0x130] sm:$0xff]  ;;  %v1341_v6 = vld [vmem:[#allocation7 + $0x118] sm:$0xff] }
  0xf2   : > { %1404 = vst [vmem:[#allocation1 + $0x23] ss:$4 sm:$0xff] %v3391_v53  ;;  %v1215_v52 = vsel %vm1177_vm5, %v3274_v10, %v1214_v3  ;;  %v3429_v62 = vmax.f32 %v1326_v7, %v3404_v36  ;;  %v3434_v19 = vmax.f32 %v1329_v21, %v3410_v12  ;;  %v1218_v10 = vsel %vm1169_vm1, %v3299_v51, %v3291_v56  ;;  %v1613_v56 = vld [vmem:[#allocation7 + $0x78] sm:$0xff]  ;;  %v1612_v51 = vld [vmem:[#allocation7 + $0x70] sm:$0xff]  ;;  %v1607_v21 = vld [vmem:[#allocation7 + $0x48] sm:$0xff] }
  0xf3   : > { %v1216_v29 = vsel %vm1179_vm6, %v3287_v54, %v1215_v52  ;;  %1688 = vmatpush.msra.mxu0 %v1669_v30  ;;  %1429 = vmatpush.msrb.mxu1 %v1349_v22  ;;  %v3442_v15 = vmax.f32 %v1332_v24, %v3416_v60  ;;  %v1348_v54 = vld [vmem:[#allocation7 + $0x150] sm:$0xff]  ;;  %v1219_v43 = vsel %vm1171_vm2, %v3301_v2, %v1218_v10  ;;  %v1611_v2 = vld [vmem:[#allocation7 + $0x68] sm:$0xff]  ;;  %v1338_v22 = vld [vmem:[#allocation7 + $0x100] sm:$0xff] }
  0xf4   : > { %v1217_v45 = vsel %vm1181_vm7, %v3289_v39, %v1216_v29  ;;  %2318 = vmatpush.msra.mxu2 %v1671_v11  ;;  %v3447_v28 = vmax.f32 %v1335_v4, %v3422_v13  ;;  %v1220_v39 = vsel %vm1173_vm3, %v3313_v20, %v1219_v43  ;;  %1614 = vmatpush.msrb.mxu3 %v1613_v56  ;;  %v1346_v20 = vld [vmem:[#allocation7 + $0x140] sm:$0xff]  ;;  %v1339_v52 = vld [vmem:[#allocation7 + $0x108] sm:$0xff]  ;;  %v1600_v56 = vld [vmem:[#allocation7 + $0x10] sm:$0xff] }
  0xf5   : > { %1271 = vmatmul.f32.gmra.mxu1 %v1217_v45  ;;  %1689 = vmatpush.msra.mxu0 %v1668_v61  ;;  %v1221_v59 = vsel %vm1175_vm4, %v3315_v25, %v1220_v39  ;;  %v1225_v50 = vsel %vm1169_vm1, %v3404_v36, %v3370_v48  ;;  %v1480_v48 = vmax.f32 %v3363_v63, %v3377_v9  ;;  %v1663_v36 = vld [vmem:[#allocation5] sm:$0xff]  ;;  %v1343_v63 = vld [vmem:[#allocation7 + $0x128] sm:$0xff]  ;;  %v1604_v45 = vld [vmem:[#allocation7 + $0x30] sm:$0xff] }
  0xf6   : > { %v3449_v5 = vld.sshfl [vmem:[#allocation1] sm:$0xff pattern:$0x73625140]  ;;  %1430 = vmatpush.msrb.mxu1 %v1348_v54  ;;  %2319 = vmatpush.msra.mxu2 %v1670_v34  ;;  %v1222_v18 = vsel %vm1177_vm5, %v3332_v31, %v1221_v59  ;;  %v1610_v31 = vld [vmem:[#allocation7 + $0x60] sm:$0xff]  ;;  %v1226_v11 = vsel %vm1171_vm2, %v3374_v33, %v1225_v50  ;;  %v1483_v7 = vmax.f32 %v3384_v44, %v3391_v53  ;;  %v2401_v29 = vld [vmem:[%s2735_s12 + $0x8] sm:$0xff] }
  0xf7   : > { %1407 = vst [vmem:[#allocation1] ss:$4 sm:$0xff] %v3429_v62  ;;  %1690 = vmatpush.msra.mxu0 %v1667_v1  ;;  %v1223_v25 = vsel %vm1179_vm6, %v3334_v58, %v1222_v18  ;;  %1615 = vmatpush.msrb.mxu3 %v1612_v51  ;;  %v1664_v58 = vld [vmem:[#allocation5 + $0x8] sm:$0xff]  ;;  %v1227_v46 = vsel %vm1173_vm3, %v3410_v12, %v1226_v11  ;;  %v2399_v53 = vld [vmem:[%s2735_s12] sm:$0xff]  ;;  %v2403_v54 = vld [vmem:[%s2735_s12 + $0x10] sm:$0xff] }
  0xf8   : > { %1408 = vst [vmem:[#allocation1 + $0x1] ss:$4 sm:$0xff] %v3434_v19  ;;  %1431 = vmatpush.msrb.mxu1 %v1347_v40  ;;  %2320 = vmatpush.msra.mxu2 %v1669_v30  ;;  %v1224_v47 = vsel %vm1181_vm7, %v3339_v55, %v1223_v25  ;;  %v1609_v55 = vld [vmem:[#allocation7 + $0x58] sm:$0xff]  ;;  %v1228_v33 = vsel %vm1175_vm4, %v3388_v38, %v1227_v46  ;;  %v1340_v30 = vld [vmem:[#allocation7 + $0x110] sm:$0xff]  ;;  %v2400_v4 = vld [vmem:[%s2735_s12 + $0x80] sm:$0xff] }
  0xf9   : > { %v3459_v8 = vld.sshfl [vmem:[#allocation1 + $0x20] sm:$0xff pattern:$0x73625140]  ;;  %1409 = vst [vmem:[#allocation1 + $0x2] ss:$4 sm:$0xff] %v3442_v15  ;;  %1691 = vmatpush.msra.mxu0 %v1666_v27  ;;  %1616 = vmatpush.msrb.mxu3 %v1611_v2  ;;  %v1229_v34 = vsel %vm1177_vm5, %v3416_v60, %v1228_v33  ;;  %v1481_v44 = vmax.f32 %v1480_v48, %v3429_v62  ;;  %v1606_v60 = vld [vmem:[#allocation7 + $0x40] sm:$0xff] }
  0xfa   : > { %1410 = vst [vmem:[#allocation1 + $0x3] ss:$4 sm:$0xff] %v3447_v28  ;;  %1432 = vmatpush.msrb.mxu1 %v1346_v20  ;;  %2321 = vmatpush.msra.mxu2 %v1668_v61  ;;  %v1230_v9 = vsel %vm1179_vm6, %v3396_v57, %v1229_v34  ;;  %v1484_v12 = vmax.f32 %v1483_v7, %v3442_v15  ;;  %v1605_v61 = vld [vmem:[#allocation7 + $0x38] sm:$0xff]  ;;  %v1602_v43 = vld [vmem:[#allocation7 + $0x20] sm:$0xff]  ;;  %v2410_v18 = vld [vmem:[%s2735_s12 + $0xa8] sm:$0xff] }
  0xfb   : > { %1411 = vst [vmem:[#allocation1 + $0x20] ss:$4 sm:$0xff] %v3429_v62  ;;  %1692 = vmatpush.msra.mxu0 %v1665_v23  ;;  %1617 = vmatpush.msrb.mxu3 %v1610_v31  ;;  %v1231_v57 = vsel %vm1181_vm7, %v3422_v13, %v1230_v9  ;;  %v3504_v37 = vmax.f32 %v1481_v44, %v3434_v19  ;;  %v1601_v39 = vld [vmem:[#allocation7 + $0x18] sm:$0xff]  ;;  %v2407_v59 = vld [vmem:[%s2735_s12 + $0x20] sm:$0xff]  ;;  %v2411_v25 = vld [vmem:[%s2735_s12 + $0x30] sm:$0xff] }
  0xfc   : > { %1412 = vst [vmem:[#allocation1 + $0x21] ss:$4 sm:$0xff] %v3434_v19  ;;  %2322 = vmatpush.msra.mxu2 %v1667_v1  ;;  %1433 = vmatpush.msrb.mxu1 %v1345_v42  ;;  %v3508_v3 = vmax.f32 %v1484_v12, %v3447_v28  ;;  %v1603_v1 = vld [vmem:[#allocation7 + $0x28] sm:$0xff]  ;;  %v2406_v51 = vld [vmem:[%s2735_s12 + $0x98] sm:$0xff]  ;;  %v1598_v2 = vld [vmem:[#allocation7] sm:$0xff] }
  0xfd   : > { %1413 = vst [vmem:[#allocation1 + $0x22] ss:$4 sm:$0xff] %v3442_v15  ;;  %1274 = vmatmul.f32.gmra.mxu1 %v1224_v47  ;;  %1693 = vmatpush.msra.mxu0 %v1664_v58  ;;  %v2402_v15 = vld [vmem:[%s2735_s12 + $0x88] sm:$0xff]  ;;  %v2408_v40 = vld [vmem:[%s2735_s12 + $0xa0] sm:$0xff]  ;;  %v2413_v47 = vld [vmem:[%s2735_s12 + $0x38] sm:$0xff] }
  0xfe   : > { %1414 = vst [vmem:[#allocation1 + $0x23] ss:$4 sm:$0xff] %v3447_v28  ;;  %2323 = vmatpush.msra.mxu2 %v1666_v27  ;;  %1618 = vmatpush.msrb.mxu3 %v1609_v55  ;;  %v2405_v28 = vld [vmem:[%s2735_s12 + $0x18] sm:$0xff]  ;;  %v2415_v42 = vld [vmem:[%s2735_s12 + $0x40] sm:$0xff]  ;;  %v1596_v50 = vmax.f32 %v3504_v37, %v3508_v3  ;;  %v2418_v48 = vld [vmem:[%s2735_s12 + $0xc8] sm:$0xff] }
  0xff   : > { %1511 = vst [vmem:[#allocation1 + $0x10] ss:$2 sm:$0xff] %v3021_v14  ;;  %1434 = vmatpush.msrb.mxu1 %v1344_v35  ;;  %1694 = vmatpush.msra.mxu0 %v1663_v36  ;;  %v2416_v55 = vld [vmem:[%s2735_s12 + $0xc0] sm:$0xff]  ;;  %v2417_v35 = vld [vmem:[%s2735_s12 + $0x48] sm:$0xff]  ;;  %v3557_v33 = vld [vmem:[%s3726_s3] ss:$0 sm:$0xff] }
 0x100   : > { %1513 = vst [vmem:[#allocation1 + $0x11] ss:$2 sm:$0xff] %v3065_v0  ;;  %2324 = vmatpush.msra.mxu2 %v1665_v23  ;;  %1619 = vmatpush.msrb.mxu3 %v1608_v17  ;;  %v2421_v7 = vld [vmem:[%s2735_s12 + $0x58] sm:$0xff]  ;;  %v2423_v9 = vld [vmem:[%s2735_s12 + $0x60] sm:$0xff]  ;;  %v2426_v12 = vld [vmem:[%s2735_s12 + $0xe8] sm:$0xff] }
 0x101   : > { %v3490_v38 = vld.sshfl [vmem:[#allocation1] sm:$0xff pattern:$0x73625140]  ;;  %1519 = vst [vmem:[#allocation1 + $0x30] ss:$2 sm:$0xff] %v3021_v14  ;;  %1695 = vmatmul.f32.vlgmr.msra.gmra.mxu0 %v2399_v53  ;;  %1435 = vmatpush.msrb.mxu1 %v1343_v63  ;;  %v2424_v53 = vld [vmem:[%s2735_s12 + $0xe0] sm:$0xff] }
 0x102   : > { %1507 = vst [vmem:[#allocation1] ss:$2 sm:$0xff] %v3021_v14  ;;  %2325 = vmatpush.msra.mxu2 %v1664_v58  ;;  %1620 = vmatpush.msrb.mxu3 %v1607_v21  ;;  %v3546_v58 = vpop.f32.mrf.mxu1  ;;  %v2422_v63 = vld [vmem:[%s2735_s12 + $0xd8] sm:$0xff] }
 0x103   : > { %1509 = vst [vmem:[#allocation1 + $0x1] ss:$2 sm:$0xff] %v3065_v0  ;;  %1436 = vmatpush.msrb.mxu1 %v1342_v32  ;;  %v2425_v32 = vld [vmem:[%s2735_s12 + $0x68] sm:$0xff] }
 0x104   : > { %1521 = vst [vmem:[#allocation1 + $0x31] ss:$2 sm:$0xff] %v3065_v0  ;;  %2326 = vmatpush.msra.mxu2 %v1663_v36  ;;  %1621 = vmatpush.msrb.mxu3 %v1606_v60  ;;  %v2420_v36 = vld [vmem:[%s2735_s12 + $0xd0] sm:$0xff] }
 0x105   : > { %v3501_v24 = vld.sshfl [vmem:[#allocation1 + $0x20] sm:$0xff pattern:$0x73625140]  ;;  %1277 = vmatmul.f32.gmra.mxu1 %v1231_v57  ;;  %1743 = vmatmul.f32.vlgmr.msra.gmra.mxu2 %v2400_v4  ;;  %v2427_v57 = vld [vmem:[%s2735_s12 + $0x70] sm:$0xff] }
 0x106   : > { %1515 = vst [vmem:[#allocation1 + $0x20] ss:$2 sm:$0xff] %v3021_v14  ;;  %1437 = vmatpush.msrb.mxu1 %v1341_v6  ;;  %1622 = vmatpush.msrb.mxu3 %v1605_v61  ;;  %v2428_v60 = vld [vmem:[%s2735_s12 + $0xf0] sm:$0xff] }
 0x107   : > { %1517 = vst [vmem:[#allocation1 + $0x21] ss:$2 sm:$0xff] %v3065_v0  ;;  %v1523_v13 = vld.sshfl [vmem:[#allocation1 + $0x10] sm:$0xff pattern:$0x75316420] }
 0x108   : > { %1528 = vst [vmem:[#allocation1 + $0x10] ss:$2 sm:$0xff] %v3504_v37  ;;  %1438 = vmatpush.msrb.mxu1 %v1340_v30  ;;  %1623 = vmatpush.msrb.mxu3 %v1604_v45 }
 0x109   : > { %1529 = vst [vmem:[#allocation1 + $0x11] ss:$2 sm:$0xff] %v3508_v3  ;;  %1698 = vmatmul.f32.gmra.mxu0 %v2401_v29 }
 0x10a   : > { %v1522_v62 = vld.sshfl [vmem:[#allocation1] sm:$0xff pattern:$0x75316420]  ;;  %1439 = vmatpush.msrb.mxu1 %v1339_v52  ;;  %1624 = vmatpush.msrb.mxu3 %v1603_v1  ;;  %v1260_v46 = vpop.f32.mrf.mxu1 }
 0x10b   : > { %1526 = vst [vmem:[#allocation1] ss:$2 sm:$0xff] %v3504_v37  ;;  %1562 = vmatmul.f32.vlgmr.msra.gmra.mxu3 %v1522_v62  ;;  %v1525_v19 = vld.sshfl [vmem:[#allocation1 + $0x30] sm:$0xff pattern:$0x75316420]  ;;  %v1282_v29 = vadd.f32 %v3557_v33, %v1260_v46 }
 0x10c   : > { %1527 = vst [vmem:[#allocation1 + $0x1] ss:$2 sm:$0xff] %v3508_v3  ;;  %1440 = vmatpush.msrb.mxu1 %v1338_v22  ;;  %1625 = vmatpush.msrb.mxu3 %v1602_v43 }
 0x10d   : > { %1532 = vst [vmem:[#allocation1 + $0x30] ss:$2 sm:$0xff] %v3504_v37  ;;  %1441 = vmatmul.f32.vlgmr.msrb.gmra.mxu1 %v3002_v16  ;;  %1746 = vmatmul.f32.gmra.mxu2 %v2402_v15  ;;  %v2404_v16 = vld [vmem:[%s2735_s12 + $0x90] sm:$0xff] }
 0x10e   : > { %v1524_v10 = vld.sshfl [vmem:[#allocation1 + $0x20] sm:$0xff pattern:$0x75316420]  ;;  %1533 = vst [vmem:[#allocation1 + $0x31] ss:$2 sm:$0xff] %v3508_v3  ;;  %1626 = vmatpush.msrb.mxu3 %v1601_v39 }
 0x10f   : > { %1530 = vst [vmem:[#allocation1 + $0x20] ss:$2 sm:$0xff] %v3504_v37 }
 0x110   : > { %1531 = vst [vmem:[#allocation1 + $0x21] ss:$2 sm:$0xff] %v3508_v3  ;;  %1627 = vmatpush.msrb.mxu3 %v1600_v56  ;;  %v1535_v20 = vld.sshfl [vmem:[#allocation1 + $0x10] sm:$0xff pattern:$0x75316420]  ;;  %v2430_v3 = vld [vmem:[%s2735_s12 + $0xf8] sm:$0xff] }
 0x111   : > { %1701 = vmatmul.f32.gmra.mxu0 %v2403_v54 }
 0x113   : > { %1565 = vmatmul.f32.gmra.mxu3 %v1523_v13  ;;  %v1534_v27 = vld.sshfl [vmem:[#allocation1] sm:$0xff pattern:$0x75316420] }
 0x115   : > { %1444 = vmatmul.f32.gmra.mxu1 %v3004_v26  ;;  %1749 = vmatmul.f32.gmra.mxu2 %v2404_v16  ;;  %v1599_v26 = vld [vmem:[#allocation7 + $0x8] sm:$0xff] }
 0x116   : > { %1628 = vmatpush.msrb.mxu3 %v1599_v26  ;;  %v1537_v31 = vld.sshfl [vmem:[#allocation1 + $0x30] sm:$0xff pattern:$0x75316420] }
 0x117   : > { %v1536_v23 = vld.sshfl [vmem:[#allocation1 + $0x20] sm:$0xff pattern:$0x75316420] }
 0x118   : > { %1629 = vmatpush.msrb.mxu3 %v1598_v2 }
 0x119   : > { %1704 = vmatmul.f32.gmra.mxu0 %v2405_v28 }
 0x11b   : > { %1568 = vmatmul.f32.gmra.mxu3 %v1524_v10 }
 0x11d   : > { %1447 = vmatmul.f32.gmra.mxu1 %v3354_v49  ;;  %1752 = vmatmul.f32.gmra.mxu2 %v2406_v51  ;;  %v2409_v49 = vld [vmem:[%s2735_s12 + $0x28] sm:$0xff] }
 0x121   : > { %1707 = vmatmul.f32.gmra.mxu0 %v2407_v59 }
 0x123   : > { %1571 = vmatmul.f32.gmra.mxu3 %v1525_v19 }
 0x125   : > { %1450 = vmatmul.f32.gmra.mxu1 %v3360_v41  ;;  %1755 = vmatmul.f32.gmra.mxu2 %v2408_v40  ;;  %v2412_v41 = vld [vmem:[%s2735_s12 + $0xb0] sm:$0xff] }
 0x129   : > { %1710 = vmatmul.f32.gmra.mxu0 %v2409_v49 }
 0x12b   : > { %1574 = vmatmul.f32.gmra.mxu3 %v1534_v27 }
 0x12d   : > { %1453 = vmatmul.f32.gmra.mxu1 %v3449_v5  ;;  %1758 = vmatmul.f32.gmra.mxu2 %v2410_v18  ;;  %v2414_v5 = vld [vmem:[%s2735_s12 + $0xb8] sm:$0xff] }
 0x131   : > { %1713 = vmatmul.f32.gmra.mxu0 %v2411_v25 }
 0x133   : > { %1577 = vmatmul.f32.gmra.mxu3 %v1535_v20 }
 0x135   : > { %1456 = vmatmul.f32.gmra.mxu1 %v3459_v8  ;;  %1761 = vmatmul.f32.gmra.mxu2 %v2412_v41  ;;  %v1595_v8 = vmax.f32 %v3021_v14, %v3065_v0  ;;  %v2419_v14 = vld [vmem:[%s2735_s12 + $0x50] sm:$0xff]  ;;  %v1263_v0 = vpop.f32.mrf.mxu1 }
 0x136   : > { %v1283_v10 = vadd.f32 %v3557_v33, %v1263_v0 }
 0x137   : > { %v1597_v11 = vmax.f32 %v1595_v8, %v1596_v50 }
 0x139   : > { %1716 = vmatmul.f32.gmra.mxu0 %v2413_v47 }
 0x13b   : > { %1580 = vmatmul.f32.gmra.mxu3 %v1536_v23 }
 0x13d   : > { %1459 = vmatmul.f32.gmra.mxu1 %v3490_v38  ;;  %1764 = vmatmul.f32.gmra.mxu2 %v2414_v5  ;;  %v1266_v17 = vpop.f32.mrf.mxu1 }
 0x13e   : > { %v1284_v34 = vadd.f32 %v3557_v33, %v1266_v17 }
 0x141   : > { %1719 = vmatmul.f32.gmra.mxu0 %v2415_v42  ;;  %v1281_v42 = vadd.f32 %v3557_v33, %v3546_v58 }
 0x143   : > { %1583 = vmatmul.f32.gmra.mxu3 %v1537_v31 }
 0x145   : > { %1462 = vmatmul.f32.gmra.mxu1 %v3501_v24  ;;  %1767 = vmatmul.f32.gmra.mxu2 %v2416_v55  ;;  %v2429_v24 = vld [vmem:[%s2735_s12 + $0x78] sm:$0xff] }
 0x149   : > { %1722 = vmatmul.f32.gmra.mxu0 %v2417_v35 }
 0x14b   : > { %1630 = vmatmul.f32.vlgmr.msrb.gmra.mxu3 %v1597_v11 }
 0x14d   : > { %1770 = vmatmul.f32.gmra.mxu2 %v2418_v48 }
 0x151   : > { %1725 = vmatmul.f32.gmra.mxu0 %v2419_v14 }
 0x153   : > { %1633 = vmatmul.f32.gmra.mxu3 %v1597_v11 }
 0x155   : > { %1773 = vmatmul.f32.gmra.mxu2 %v2420_v36 }
 0x159   : > { %1728 = vmatmul.f32.gmra.mxu0 %v2421_v7 }
 0x15b   : > { %1636 = vmatmul.f32.gmra.mxu3 %v1597_v11 }
 0x15d   : > { %1776 = vmatmul.f32.gmra.mxu2 %v2422_v63 }
 0x161   : > { %1731 = vmatmul.f32.gmra.mxu0 %v2423_v9 }
 0x163   : > { %1639 = vmatmul.f32.gmra.mxu3 %v1597_v11 }
 0x165   : > { %v1269_v38 = vpop.f32.mrf.mxu1  ;;  %1779 = vmatmul.f32.gmra.mxu2 %v2424_v53 }
 0x166   : > { %v1285_v44 = vadd.f32 %v3557_v33, %v1269_v38 }
 0x169   : > { %1734 = vmatmul.f32.gmra.mxu0 %v2425_v32 }
 0x16b   : > { %1642 = vmatmul.f32.gmra.mxu3 %v1597_v11 }
 0x16d   : > { %1782 = vmatmul.f32.gmra.mxu2 %v2426_v12 }
 0x171   : > { %1737 = vmatmul.f32.gmra.mxu0 %v2427_v57 }
 0x172   : > { %v1272_v21 = vpop.f32.mrf.mxu1 }
 0x173   : > { %1645 = vmatmul.f32.gmra.mxu3 %v1597_v11  ;;  %v1286_v6 = vadd.f32 %v3557_v33, %v1272_v21 }
 0x175   : > { %1785 = vmatmul.f32.gmra.mxu2 %v2428_v60 }
 0x179   : > { %1740 = vmatmul.f32.gmra.mxu0 %v2429_v24 }
 0x17a   : > { %v1275_v37 = vpop.f32.mrf.mxu1 }
 0x17b   : > { %1648 = vmatmul.f32.gmra.mxu3 %v1597_v11  ;;  %v1287_v30 = vadd.f32 %v3557_v33, %v1275_v37 }
 0x17d   : > { %1788 = vmatmul.f32.gmra.mxu2 %v2430_v3 }
 0x17e   : > { %v3580_v15 = vpop.f32.mrf.mxu0 }
 0x182   : > { %v1278_v13 = vpop.f32.mrf.mxu1 }
 0x183   : > { %1651 = vmatmul.f32.gmra.mxu3 %v1597_v11  ;;  %v3574_v4 = vadd.f32 %v3557_v33, %v1278_v13 }
 0x186   : > { %v1699_v39 = vpop.f32.mrf.mxu0 }
 0x18a   : > { %v1442_v52 = vpop.f32.mrf.mxu1 }
 0x18b   : > { %v1466_v8 = vadd.f32 %v1442_v52, %v1281_v42 }
 0x18e   : > { %v1563_v62 = vpop.f32.mrf.mxu3  ;;  %v3586_v40 = vpop.f32.mrf.mxu0 }
 0x18f   : > { %v1587_v46 = vadd.f32 %v1563_v62, %v1466_v8 }
 0x192   : > { %v1445_v22 = vpop.f32.mrf.mxu1 }
 0x193   : > { %v1467_v61 = vadd.f32 %v1445_v22, %v1282_v29 }
 0x196   : > { %v1566_v19 = vpop.f32.mrf.mxu3  ;;  %v3590_v20 = vpop.f32.mrf.mxu0 }
 0x197   : > { %v3577_v45 = vadd.f32 %v1566_v19, %v1467_v61 }
 0x19a   : > { %v1448_v54 = vpop.f32.mrf.mxu1 }
 0x19b   : > { %v1468_v1 = vadd.f32 %v1448_v54, %v1283_v10 }
 0x19e   : > { %v1569_v43 = vpop.f32.mrf.mxu3  ;;  %v3594_v5 = vpop.f32.mrf.mxu0 }
 0x19f   : > { %v3582_v16 = vadd.f32 %v1569_v43, %v1468_v1 }
 0x1a2   : > { %v1451_v28 = vpop.f32.mrf.mxu1 }
 0x1a3   : > { %v1469_v56 = vadd.f32 %v1451_v28, %v1284_v34 }
 0x1a6   : > { %v1572_v51 = vpop.f32.mrf.mxu3  ;;  %v3600_v55 = vpop.f32.mrf.mxu0 }
 0x1a7   : > { %v3584_v59 = vadd.f32 %v1572_v51, %v1469_v56 }
 0x1aa   : > { %v1454_v26 = vpop.f32.mrf.mxu1 }
 0x1ab   : > { %v1470_v2 = vadd.f32 %v1454_v26, %v1285_v44 }
 0x1ae   : > { %v1575_v27 = vpop.f32.mrf.mxu3  ;;  %v3604_v12 = vpop.f32.mrf.mxu0 }
 0x1af   : > { %v3588_v49 = vadd.f32 %v1575_v27, %v1470_v2 }
 0x1b2   : > { %v1457_v25 = vpop.f32.mrf.mxu1 }
 0x1b3   : > { %v1471_v41 = vadd.f32 %v1457_v25, %v1286_v6 }
 0x1b6   : > { %v1578_v18 = vpop.f32.mrf.mxu3  ;;  %v3606_v24 = vpop.f32.mrf.mxu0 }
 0x1b7   : > { %v3592_v23 = vadd.f32 %v1578_v18, %v1471_v41 }
 0x1ba   : > { %v1460_v50 = vpop.f32.mrf.mxu1 }
 0x1bb   : > { %v1472_v11 = vadd.f32 %v1460_v50, %v1287_v30 }
 0x1be   : > { %v1581_v47 = vpop.f32.mrf.mxu3  ;;  %v3617_v54 = vpop.f32.mrf.mxu0 }
 0x1bf   : > { %v3602_v35 = vadd.f32 %v1581_v47, %v1472_v11 }
 0x1c2   : > { %v1463_v29 = vpop.f32.mrf.mxu1 }
 0x1c3   : > { %v1473_v1 = vadd.f32 %v1463_v29, %v3574_v4 }
 0x1c6   : > { %v3596_v31 = vpop.f32.mrf.mxu3  ;;  %v1723_v41 = vpop.f32.mrf.mxu0 }
 0x1ce   : > { %v1631_v48 = vpop.f32.mrf.mxu3 }
 0x1cf   : > { %v1655_v14 = vadd.f32 %v1631_v48, %v1587_v46 }
 0x1d1   : > { %v1800_v0 = vrot.slane %v1655_v14, 1  ;;  %v1801_v36 = vrot.slane %v1655_v14, 2  ;;  %v1802_v7 = vrot.slane %v1655_v14, 3  ;;  %v1803_v17 = vrot.slane %v1655_v14, 4 }
 0x1d2   : > { %v1804_v34 = vrot.slane %v1655_v14, 5  ;;  %v1805_v63 = vrot.slane %v1655_v14, 6  ;;  %v1856_v9 = vperm.slane %v1655_v14, 0  ;;  %v1806_v38 = vrot.slane %v1655_v14, 7 }
 0x1d3   : > { %v1857_v44 = vperm.slane %v1800_v0, 0  ;;  %v1858_v58 = vperm.slane %v1801_v36, 0  ;;  %v1859_v33 = vperm.slane %v1802_v7, 0  ;;  %v1860_v53 = vperm.slane %v1803_v17, 0 }
 0x1d4   : > { %1920 = vst [vmem:[#allocation1] ss:$4 sm:$0xff] %v1856_v9  ;;  %v1861_v32 = vperm.slane %v1804_v34, 0  ;;  %v1862_v57 = vperm.slane %v1805_v63, 0  ;;  %v1863_v21 = vperm.slane %v1806_v38, 0 }
 0x1d5   : > { %1922 = vst [vmem:[#allocation1 + $0x1] ss:$4 sm:$0xff] %v1857_v44 }
 0x1d6   : > { %1924 = vst [vmem:[#allocation1 + $0x2] ss:$4 sm:$0xff] %v1858_v58  ;;  %v1634_v60 = vpop.f32.mrf.mxu3 }
 0x1d7   : > { %1926 = vst [vmem:[#allocation1 + $0x3] ss:$4 sm:$0xff] %v1859_v33  ;;  %v1656_v37 = vadd.f32 %v1634_v60, %v3577_v45 }
 0x1d8   : > { %1928 = vst [vmem:[#allocation1 + $0x20] ss:$4 sm:$0xff] %v1860_v53 }
 0x1d9   : > { %1930 = vst [vmem:[#allocation1 + $0x21] ss:$4 sm:$0xff] %v1861_v32  ;;  %v1807_v52 = vrot.slane %v1656_v37, 1  ;;  %v1808_v62 = vrot.slane %v1656_v37, 2  ;;  %v1809_v22 = vrot.slane %v1656_v37, 3  ;;  %v1864_v61 = vperm.slane %v1656_v37, 0 }
 0x1da   : > { %1932 = vst [vmem:[#allocation1 + $0x22] ss:$4 sm:$0xff] %v1862_v57  ;;  %v1810_v45 = vrot.slane %v1656_v37, 4  ;;  %v1811_v43 = vrot.slane %v1656_v37, 5  ;;  %v1813_v56 = vrot.slane %v1656_v37, 7 }
 0x1db   : > { %1934 = vst [vmem:[#allocation1 + $0x23] ss:$4 sm:$0xff] %v1863_v21  ;;  %v1865_v10 = vperm.slane %v1807_v52, 0  ;;  %v1866_v28 = vperm.slane %v1808_v62, 0  ;;  %v1867_v51 = vperm.slane %v1809_v22, 0 }
 0x1dc   : > { %v1868_v2 = vperm.slane %v1810_v45, 0  ;;  %v1869_v18 = vperm.slane %v1811_v43, 0  ;;  %v1871_v25 = vperm.slane %v1813_v56, 0 }
 0x1de   : > { %v1935_v6 = vld.sshfl [vmem:[#allocation1] sm:$0xff pattern:$0x73625140]  ;;  %v1637_v42 = vpop.f32.mrf.mxu3 }
 0x1df   : > { %1937 = vst [vmem:[#allocation1] ss:$4 sm:$0xff] %v1856_v9  ;;  %v2119_v3 = vadd.f32 %v1935_v6, %v3580_v15 }
 0x1e0   : > { %1938 = vst [vmem:[#allocation1 + $0x1] ss:$4 sm:$0xff] %v1857_v44 }
 0x1e1   : > { %1939 = vst [vmem:[#allocation1 + $0x2] ss:$4 sm:$0xff] %v1858_v58 }
 0x1e2   : > { %v1936_v30 = vld.sshfl [vmem:[#allocation1 + $0x20] sm:$0xff pattern:$0x73625140]  ;;  %1940 = vst [vmem:[#allocation1 + $0x3] ss:$4 sm:$0xff] %v1859_v33 }
 0x1e3   : > { %1941 = vst [vmem:[#allocation1 + $0x20] ss:$4 sm:$0xff] %v1860_v53  ;;  %v2120_v13 = vadd.f32 %v1936_v30, %v1699_v39  ;;  %v1812_v39 = vrot.slane %v1656_v37, 6 }
 0x1e4   : > { %1942 = vst [vmem:[#allocation1 + $0x21] ss:$4 sm:$0xff] %v1861_v32 }
 0x1e5   : > { %1943 = vst [vmem:[#allocation1 + $0x22] ss:$4 sm:$0xff] %v1862_v57  ;;  %v1870_v4 = vperm.slane %v1812_v39, 0 }
 0x1e6   : > { %1944 = vst [vmem:[#allocation1 + $0x23] ss:$4 sm:$0xff] %v1863_v21  ;;  %v1640_v37 = vpop.f32.mrf.mxu3 }
 0x1e7   : > { %2151 = vst [vmem:[%s3612_s6] sm:$0xff] %v2119_v3 }
 0x1e8   : > { %2152 = vst [vmem:[%s3612_s6 + $0x8] sm:$0xff] %v2120_v13 }
 0x1e9   : > { %v1945_v19 = vld.sshfl [vmem:[#allocation1] sm:$0xff pattern:$0x73625140] }
 0x1ea   : > { %v2121_v15 = vadd.f32 %v1945_v19, %v3586_v40  ;;  %1947 = vst [vmem:[#allocation1] ss:$4 sm:$0xff] %v1864_v61  ;;  %v3623_v40 = vadd.f32 %v3596_v31, %v1473_v1  ;;  %v1657_v31 = vadd.f32 %v1637_v42, %v3582_v16 }
 0x1eb   : > { %1948 = vst [vmem:[#allocation1 + $0x1] ss:$4 sm:$0xff] %v1865_v10 }
 0x1ec   : > { %2153 = vst [vmem:[%s3612_s6 + $0x10] sm:$0xff] %v2121_v15  ;;  %v1814_v46 = vrot.slane %v1657_v31, 1  ;;  %v1815_v48 = vrot.slane %v1657_v31, 2  ;;  %v1816_v14 = vrot.slane %v1657_v31, 3  ;;  %v1872_v0 = vperm.slane %v1657_v31, 0 }
 0x1ed   : > { %v1946_v26 = vld.sshfl [vmem:[#allocation1 + $0x20] sm:$0xff pattern:$0x73625140]  ;;  %1949 = vst [vmem:[#allocation1 + $0x2] ss:$4 sm:$0xff] %v1866_v28  ;;  %v1817_v7 = vrot.slane %v1657_v31, 4 }
 0x1ee   : > { %v2122_v27 = vadd.f32 %v1946_v26, %v3590_v20  ;;  %1950 = vst [vmem:[#allocation1 + $0x3] ss:$4 sm:$0xff] %v1867_v51  ;;  %v3627_v20 = vpop.f32.mrf.mxu2  ;;  %v1873_v17 = vperm.slane %v1814_v46, 0  ;;  %v1818_v34 = vrot.slane %v1657_v31, 5  ;;  %v1819_v9 = vrot.slane %v1657_v31, 6 }
 0x1ef   : > { %1951 = vst [vmem:[#allocation1 + $0x20] ss:$4 sm:$0xff] %v1868_v2  ;;  %v1875_v38 = vperm.slane %v1816_v14, 0  ;;  %v1820_v44 = vrot.slane %v1657_v31, 7  ;;  %v1876_v58 = vperm.slane %v1817_v7, 0 }
 0x1f0   : > { %2154 = vst [vmem:[%s3612_s6 + $0x18] sm:$0xff] %v2122_v27  ;;  %v1877_v53 = vperm.slane %v1818_v34, 0 }
 0x1f1   : > { %1952 = vst [vmem:[#allocation1 + $0x21] ss:$4 sm:$0xff] %v1869_v18  ;;  %v1879_v57 = vperm.slane %v1820_v44, 0 }
 0x1f2   : > { %1953 = vst [vmem:[#allocation1 + $0x22] ss:$4 sm:$0xff] %v1870_v4 }
 0x1f3   : > { %1954 = vst [vmem:[#allocation1 + $0x23] ss:$4 sm:$0xff] %v1871_v25 }
 0x1f5   : > { %v1955_v47 = vld.sshfl [vmem:[#allocation1] sm:$0xff pattern:$0x73625140] }
 0x1f6   : > { %1957 = vst [vmem:[#allocation1] ss:$4 sm:$0xff] %v1864_v61  ;;  %v2123_v8 = vadd.f32 %v1955_v47, %v3594_v5  ;;  %v1726_v5 = vpop.f32.mrf.mxu0  ;;  %v3634_v63 = vpop.f32.mrf.mxu2 }
 0x1f7   : > { %1958 = vst [vmem:[#allocation1 + $0x1] ss:$4 sm:$0xff] %v1865_v10  ;;  %v1643_v47 = vpop.f32.mrf.mxu3 }
 0x1f8   : > { %1959 = vst [vmem:[#allocation1 + $0x2] ss:$4 sm:$0xff] %v1866_v28 }
 0x1f9   : > { %1960 = vst [vmem:[#allocation1 + $0x3] ss:$4 sm:$0xff] %v1867_v51 }
 0x1fa   : > { %v1956_v50 = vld.sshfl [vmem:[#allocation1 + $0x20] sm:$0xff pattern:$0x73625140]  ;;  %2155 = vst [vmem:[%s3612_s6 + $0x20] sm:$0xff] %v2123_v8  ;;  %v1659_v8 = vadd.f32 %v1643_v47, %v3588_v49 }
 0x1fb   : > { %1961 = vst [vmem:[#allocation1 + $0x20] ss:$4 sm:$0xff] %v1868_v2  ;;  %v2124_v11 = vadd.f32 %v1956_v50, %v3600_v55  ;;  %v1874_v55 = vperm.slane %v1815_v48, 0 }
 0x1fc   : > { %1962 = vst [vmem:[#allocation1 + $0x21] ss:$4 sm:$0xff] %v1869_v18  ;;  %v1828_v46 = vrot.slane %v1659_v8, 1  ;;  %v1830_v14 = vrot.slane %v1659_v8, 3  ;;  %v1831_v7 = vrot.slane %v1659_v8, 4 }
 0x1fd   : > { %1963 = vst [vmem:[#allocation1 + $0x22] ss:$4 sm:$0xff] %v1870_v4 }
 0x1fe   : > { %1964 = vst [vmem:[#allocation1 + $0x23] ss:$4 sm:$0xff] %v1871_v25  ;;  %v1729_v21 = vpop.f32.mrf.mxu0  ;;  %v3639_v6 = vpop.f32.mrf.mxu2  ;;  %v1889_v49 = vperm.slane %v1828_v46, 0 }
 0x1ff   : > { %2156 = vst [vmem:[%s3612_s6 + $0x28] sm:$0xff] %v2124_v11 }
 0x200   : > { %v1965_v36 = vld.sshfl [vmem:[#allocation1] sm:$0xff pattern:$0x73625140] }
 0x201   : > { %v2125_v16 = vadd.f32 %v1965_v36, %v3604_v12  ;;  %1967 = vst [vmem:[#allocation1] ss:$4 sm:$0xff] %v1872_v0  ;;  %v1878_v12 = vperm.slane %v1819_v9, 0  ;;  %v1891_v9 = vperm.slane %v1830_v14, 0 }
 0x202   : > { %1968 = vst [vmem:[#allocation1 + $0x1] ss:$4 sm:$0xff] %v1873_v17 }
 0x203   : > { %2157 = vst [vmem:[%s3612_s6 + $0x30] sm:$0xff] %v2125_v16 }
 0x204   : > { %1969 = vst [vmem:[#allocation1 + $0x2] ss:$4 sm:$0xff] %v1874_v55 }
 0x205   : > { %v1966_v33 = vld.sshfl [vmem:[#allocation1 + $0x20] sm:$0xff pattern:$0x73625140]  ;;  %1970 = vst [vmem:[#allocation1 + $0x3] ss:$4 sm:$0xff] %v1875_v38 }
 0x206   : > { %v2126_v32 = vadd.f32 %v1966_v33, %v3606_v24  ;;  %1971 = vst [vmem:[#allocation1 + $0x20] ss:$4 sm:$0xff] %v1876_v58  ;;  %v1658_v24 = vadd.f32 %v1640_v37, %v3584_v59  ;;  %v1732_v52 = vpop.f32.mrf.mxu0  ;;  %v3644_v61 = vpop.f32.mrf.mxu2 }
 0x207   : > { %1972 = vst [vmem:[#allocation1 + $0x21] ss:$4 sm:$0xff] %v1877_v53  ;;  %v1646_v37 = vpop.f32.mrf.mxu3 }
 0x208   : > { %2158 = vst [vmem:[%s3612_s6 + $0x38] sm:$0xff] %v2126_v32  ;;  %v1821_v62 = vrot.slane %v1658_v24, 1  ;;  %v1822_v29 = vrot.slane %v1658_v24, 2  ;;  %v1823_v22 = vrot.slane %v1658_v24, 3  ;;  %v1880_v19 = vperm.slane %v1658_v24, 0 }
 0x209   : > { %1973 = vst [vmem:[#allocation1 + $0x22] ss:$4 sm:$0xff] %v1878_v12  ;;  %v1824_v10 = vrot.slane %v1658_v24, 4  ;;  %v1825_v15 = vrot.slane %v1658_v24, 5  ;;  %v1826_v43 = vrot.slane %v1658_v24, 6  ;;  %v1827_v39 = vrot.slane %v1658_v24, 7 }
 0x20a   : > { %1974 = vst [vmem:[#allocation1 + $0x23] ss:$4 sm:$0xff] %v1879_v57  ;;  %v1881_v59 = vperm.slane %v1821_v62, 0  ;;  %v1883_v28 = vperm.slane %v1823_v22, 0  ;;  %v1660_v24 = vadd.f32 %v1646_v37, %v3592_v23 }
 0x20b   : > { %v1884_v56 = vperm.slane %v1824_v10, 0  ;;  %v1885_v26 = vperm.slane %v1825_v15, 0  ;;  %v1886_v27 = vperm.slane %v1826_v43, 0  ;;  %v1887_v4 = vperm.slane %v1827_v39, 0 }
 0x20c   : > { %v1975_v60 = vld.sshfl [vmem:[#allocation1] sm:$0xff pattern:$0x73625140]  ;;  %v1835_v62 = vrot.slane %v1660_v24, 1  ;;  %v1837_v22 = vrot.slane %v1660_v24, 3  ;;  %v1839_v10 = vrot.slane %v1660_v24, 5 }
 0x20d   : > { %1977 = vst [vmem:[#allocation1] ss:$4 sm:$0xff] %v1872_v0  ;;  %v2127_v30 = vadd.f32 %v1975_v60, %v3617_v54  ;;  %v1882_v54 = vperm.slane %v1822_v29, 0  ;;  %v1888_v0 = vperm.slane %v1659_v8, 0  ;;  %v1836_v29 = vrot.slane %v1660_v24, 2 }
 0x20e   : > { %1978 = vst [vmem:[#allocation1 + $0x1] ss:$4 sm:$0xff] %v1873_v17  ;;  %v1735_v2 = vpop.f32.mrf.mxu0  ;;  %v3648_v25 = vpop.f32.mrf.mxu2  ;;  %v1832_v17 = vrot.slane %v1659_v8, 5 }
 0x20f   : > { %1979 = vst [vmem:[#allocation1 + $0x2] ss:$4 sm:$0xff] %v1874_v55  ;;  %v1833_v55 = vrot.slane %v1659_v8, 6 }
 0x210   : > { %1980 = vst [vmem:[#allocation1 + $0x3] ss:$4 sm:$0xff] %v1875_v38  ;;  %v1834_v38 = vrot.slane %v1659_v8, 7 }
 0x211   : > { %v1976_v3 = vld.sshfl [vmem:[#allocation1 + $0x20] sm:$0xff pattern:$0x73625140]  ;;  %2159 = vst [vmem:[%s3612_s6 + $0x40] sm:$0xff] %v2127_v30  ;;  %v1894_v32 = vperm.slane %v1833_v55, 0 }
 0x212   : > { %1981 = vst [vmem:[#allocation1 + $0x20] ss:$4 sm:$0xff] %v1876_v58  ;;  %v2128_v13 = vadd.f32 %v1976_v3, %v1723_v41  ;;  %v1892_v58 = vperm.slane %v1831_v7, 0 }
 0x213   : > { %1982 = vst [vmem:[#allocation1 + $0x21] ss:$4 sm:$0xff] %v1877_v53  ;;  %v1893_v53 = vperm.slane %v1832_v17, 0 }
 0x214   : > { %1983 = vst [vmem:[#allocation1 + $0x22] ss:$4 sm:$0xff] %v1878_v12 }
 0x215   : > { %1984 = vst [vmem:[#allocation1 + $0x23] ss:$4 sm:$0xff] %v1879_v57 }
 0x216   : > { %2160 = vst [vmem:[%s3612_s6 + $0x48] sm:$0xff] %v2128_v13  ;;  %v1738_v31 = vpop.f32.mrf.mxu0  ;;  %v3653_v48 = vpop.f32.mrf.mxu2 }
 0x217   : > { %v1985_v45 = vld.sshfl [vmem:[#allocation1] sm:$0xff pattern:$0x73625140] }
 0x218   : > { %1987 = vst [vmem:[#allocation1] ss:$4 sm:$0xff] %v1880_v19  ;;  %v2129_v1 = vadd.f32 %v1985_v45, %v1726_v5  ;;  %v1829_v5 = vrot.slane %v1659_v8, 2  ;;  %v1897_v45 = vperm.slane %v1835_v62, 0 }
 0x219   : > { %1988 = vst [vmem:[#allocation1 + $0x1] ss:$4 sm:$0xff] %v1881_v59 }
 0x21a   : > { %1989 = vst [vmem:[#allocation1 + $0x2] ss:$4 sm:$0xff] %v1882_v54  ;;  %v1890_v16 = vperm.slane %v1829_v5, 0 }
 0x21b   : > { %1990 = vst [vmem:[#allocation1 + $0x3] ss:$4 sm:$0xff] %v1883_v28 }
 0x21c   : > { %v1986_v51 = vld.sshfl [vmem:[#allocation1 + $0x20] sm:$0xff pattern:$0x73625140]  ;;  %2161 = vst [vmem:[%s3612_s6 + $0x50] sm:$0xff] %v2129_v1  ;;  %v1841_v1 = vrot.slane %v1660_v24, 7 }
 0x21d   : > { %1991 = vst [vmem:[#allocation1 + $0x20] ss:$4 sm:$0xff] %v1884_v56  ;;  %v2130_v18 = vadd.f32 %v1986_v51, %v1729_v21  ;;  %v1895_v21 = vperm.slane %v1834_v38, 0 }
 0x21e   : > { %1992 = vst [vmem:[#allocation1 + $0x21] ss:$4 sm:$0xff] %v1885_v26  ;;  %v1741_v44 = vpop.f32.mrf.mxu0  ;;  %v3657_v12 = vpop.f32.mrf.mxu2 }
 0x21f   : > { %1993 = vst [vmem:[#allocation1 + $0x22] ss:$4 sm:$0xff] %v1886_v27 }
 0x220   : > { %1994 = vst [vmem:[#allocation1 + $0x23] ss:$4 sm:$0xff] %v1887_v4 }
 0x221   : > { %2162 = vst [vmem:[%s3612_s6 + $0x58] sm:$0xff] %v2130_v18 }
 0x222   : > { %v1995_v41 = vld.sshfl [vmem:[#allocation1] sm:$0xff pattern:$0x73625140] }
 0x223   : > { %1997 = vst [vmem:[#allocation1] ss:$4 sm:$0xff] %v1880_v19  ;;  %v2131_v42 = vadd.f32 %v1995_v41, %v1732_v52  ;;  %v1838_v19 = vrot.slane %v1660_v24, 4 }
 0x224   : > { %1998 = vst [vmem:[#allocation1 + $0x1] ss:$4 sm:$0xff] %v1881_v59  ;;  %v1898_v59 = vperm.slane %v1836_v29, 0 }
 0x225   : > { %1999 = vst [vmem:[#allocation1 + $0x2] ss:$4 sm:$0xff] %v1882_v54  ;;  %v1899_v54 = vperm.slane %v1837_v22, 0  ;;  %v1900_v43 = vperm.slane %v1838_v19, 0 }
 0x226   : > { %2000 = vst [vmem:[#allocation1 + $0x3] ss:$4 sm:$0xff] %v1883_v28  ;;  %v3662_v13 = vpop.f32.mrf.mxu2 }
 0x227   : > { %v1996_v50 = vld.sshfl [vmem:[#allocation1 + $0x20] sm:$0xff pattern:$0x73625140]  ;;  %2163 = vst [vmem:[%s3612_s6 + $0x60] sm:$0xff] %v2131_v42 }
 0x228   : > { %2001 = vst [vmem:[#allocation1 + $0x20] ss:$4 sm:$0xff] %v1884_v56  ;;  %v2132_v11 = vadd.f32 %v1996_v50, %v1735_v2  ;;  %v1901_v56 = vperm.slane %v1839_v10, 0 }
 0x229   : > { %2002 = vst [vmem:[#allocation1 + $0x21] ss:$4 sm:$0xff] %v1885_v26 }
 0x22a   : > { %2003 = vst [vmem:[#allocation1 + $0x22] ss:$4 sm:$0xff] %v1886_v27  ;;  %v1649_v27 = vpop.f32.mrf.mxu3 }
 0x22b   : > { %2004 = vst [vmem:[#allocation1 + $0x23] ss:$4 sm:$0xff] %v1887_v4  ;;  %v1661_v4 = vadd.f32 %v1649_v27, %v3602_v35 }
 0x22c   : > { %2164 = vst [vmem:[%s3612_s6 + $0x68] sm:$0xff] %v2132_v11 }
 0x22d   : > { %v2005_v36 = vld.sshfl [vmem:[#allocation1] sm:$0xff pattern:$0x73625140]  ;;  %v1842_v47 = vrot.slane %v1661_v4, 1  ;;  %v1843_v8 = vrot.slane %v1661_v4, 2  ;;  %v1845_v46 = vrot.slane %v1661_v4, 4 }
 0x22e   : > { %2007 = vst [vmem:[#allocation1] ss:$4 sm:$0xff] %v1888_v0  ;;  %v2133_v34 = vadd.f32 %v2005_v36, %v1738_v31  ;;  %v1768_v28 = vpop.f32.mrf.mxu2  ;;  %v1844_v31 = vrot.slane %v1661_v4, 3  ;;  %v1846_v5 = vrot.slane %v1661_v4, 5  ;;  %v1847_v36 = vrot.slane %v1661_v4, 6 }
 0x22f   : > { %2008 = vst [vmem:[#allocation1 + $0x1] ss:$4 sm:$0xff] %v1889_v49  ;;  %v1905_v50 = vperm.slane %v1842_v47, 0  ;;  %v1906_v14 = vperm.slane %v1843_v8, 0  ;;  %v1848_v7 = vrot.slane %v1661_v4, 7 }
 0x230   : > { %2009 = vst [vmem:[#allocation1 + $0x2] ss:$4 sm:$0xff] %v1890_v16  ;;  %v1909_v17 = vperm.slane %v1846_v5, 0  ;;  %v1910_v55 = vperm.slane %v1847_v36, 0 }
 0x231   : > { %2010 = vst [vmem:[#allocation1 + $0x3] ss:$4 sm:$0xff] %v1891_v9 }
 0x232   : > { %v2006_v33 = vld.sshfl [vmem:[#allocation1 + $0x20] sm:$0xff pattern:$0x73625140]  ;;  %2165 = vst [vmem:[%s3612_s6 + $0x70] sm:$0xff] %v2133_v34 }
 0x233   : > { %2011 = vst [vmem:[#allocation1 + $0x20] ss:$4 sm:$0xff] %v1892_v58  ;;  %v2134_v57 = vadd.f32 %v2006_v33, %v1741_v44 }
 0x234   : > { %2012 = vst [vmem:[#allocation1 + $0x21] ss:$4 sm:$0xff] %v1893_v53 }
 0x235   : > { %2013 = vst [vmem:[#allocation1 + $0x22] ss:$4 sm:$0xff] %v1894_v32 }
 0x236   : > { %2014 = vst [vmem:[#allocation1 + $0x23] ss:$4 sm:$0xff] %v1895_v21  ;;  %v1771_v41 = vpop.f32.mrf.mxu2 }
 0x237   : > { %2166 = vst [vmem:[%s3612_s6 + $0x78] sm:$0xff] %v2134_v57 }
 0x238   : > { %v2015_v60 = vld.sshfl [vmem:[#allocation1] sm:$0xff pattern:$0x73625140] }
 0x239   : > { %2017 = vst [vmem:[#allocation1] ss:$4 sm:$0xff] %v1888_v0  ;;  %v2135_v30 = vadd.f32 %v2015_v60, %v3627_v20  ;;  %v1896_v20 = vperm.slane %v1660_v24, 0 }
 0x23a   : > { %2018 = vst [vmem:[#allocation1 + $0x1] ss:$4 sm:$0xff] %v1889_v49  ;;  %v1908_v49 = vperm.slane %v1845_v46, 0 }
 0x23b   : > { %2019 = vst [vmem:[#allocation1 + $0x2] ss:$4 sm:$0xff] %v1890_v16 }
 0x23c   : > { %2020 = vst [vmem:[#allocation1 + $0x3] ss:$4 sm:$0xff] %v1891_v9  ;;  %v1911_v9 = vperm.slane %v1848_v7, 0 }
 0x23d   : > { %v2016_v3 = vld.sshfl [vmem:[#allocation1 + $0x20] sm:$0xff pattern:$0x73625140]  ;;  %2167 = vst [vmem:[%s3612_s6 + $0x80] sm:$0xff] %v2135_v30 }
 0x23e   : > { %2021 = vst [vmem:[#allocation1 + $0x20] ss:$4 sm:$0xff] %v1892_v58  ;;  %v2136_v52 = vadd.f32 %v2016_v3, %v3634_v63  ;;  %v1840_v63 = vrot.slane %v1660_v24, 6  ;;  %v1774_v0 = vpop.f32.mrf.mxu2  ;;  %v1652_v58 = vpop.f32.mrf.mxu3 }
 0x23f   : > { %2022 = vst [vmem:[#allocation1 + $0x21] ss:$4 sm:$0xff] %v1893_v53  ;;  %v1662_v53 = vadd.f32 %v1652_v58, %v3623_v40 }
 0x240   : > { %2023 = vst [vmem:[#allocation1 + $0x22] ss:$4 sm:$0xff] %v1894_v32  ;;  %v1902_v26 = vperm.slane %v1840_v63, 0 }
 0x241   : > { %2024 = vst [vmem:[#allocation1 + $0x23] ss:$4 sm:$0xff] %v1895_v21  ;;  %v1849_v57 = vrot.slane %v1662_v53, 1  ;;  %v1850_v21 = vrot.slane %v1662_v53, 2  ;;  %v1851_v37 = vrot.slane %v1662_v53, 3  ;;  %v1912_v30 = vperm.slane %v1662_v53, 0 }
 0x242   : > { %2168 = vst [vmem:[%s3612_s6 + $0x88] sm:$0xff] %v2136_v52  ;;  %v1853_v40 = vrot.slane %v1662_v53, 5  ;;  %v1854_v22 = vrot.slane %v1662_v53, 6 }
 0x243   : > { %v2025_v23 = vld.sshfl [vmem:[#allocation1] sm:$0xff pattern:$0x73625140]  ;;  %v1913_v24 = vperm.slane %v1849_v57, 0  ;;  %v1914_v62 = vperm.slane %v1850_v21, 0  ;;  %v1915_v29 = vperm.slane %v1851_v37, 0 }
 0x244   : > { %2027 = vst [vmem:[#allocation1] ss:$4 sm:$0xff] %v1896_v20  ;;  %v2137_v15 = vadd.f32 %v2025_v23, %v3639_v6  ;;  %v1903_v6 = vperm.slane %v1841_v1, 0 }
 0x245   : > { %2028 = vst [vmem:[#allocation1 + $0x1] ss:$4 sm:$0xff] %v1897_v45 }
 0x246   : > { %2029 = vst [vmem:[#allocation1 + $0x2] ss:$4 sm:$0xff] %v1898_v59  ;;  %v1777_v44 = vpop.f32.mrf.mxu2 }
 0x247   : > { %2030 = vst [vmem:[#allocation1 + $0x3] ss:$4 sm:$0xff] %v1899_v54 }
 0x248   : > { %v2026_v39 = vld.sshfl [vmem:[#allocation1 + $0x20] sm:$0xff pattern:$0x73625140]  ;;  %2169 = vst [vmem:[%s3612_s6 + $0x90] sm:$0xff] %v2137_v15 }
 0x249   : > { %v2138_v51 = vadd.f32 %v2026_v39, %v3644_v61  ;;  %2031 = vst [vmem:[#allocation1 + $0x20] ss:$4 sm:$0xff] %v1900_v43 }
 0x24a   : > { %2032 = vst [vmem:[#allocation1 + $0x21] ss:$4 sm:$0xff] %v1901_v56 }
 0x24b   : > { %2170 = vst [vmem:[%s3612_s6 + $0x98] sm:$0xff] %v2138_v51 }
 0x24c   : > { %2033 = vst [vmem:[#allocation1 + $0x22] ss:$4 sm:$0xff] %v1902_v26 }
 0x24d   : > { %2034 = vst [vmem:[#allocation1 + $0x23] ss:$4 sm:$0xff] %v1903_v6 }
 0x24e   : > { %v2035_v2 = vld.sshfl [vmem:[#allocation1] sm:$0xff pattern:$0x73625140]  ;;  %v1780_v60 = vpop.f32.mrf.mxu2 }
 0x24f   : > { %2037 = vst [vmem:[#allocation1] ss:$4 sm:$0xff] %v1896_v20  ;;  %v2139_v18 = vadd.f32 %v2035_v2, %v3648_v25  ;;  %v1904_v25 = vperm.slane %v1661_v4, 0  ;;  %v1855_v20 = vrot.slane %v1662_v53, 7 }
 0x250   : > { %2038 = vst [vmem:[#allocation1 + $0x1] ss:$4 sm:$0xff] %v1897_v45  ;;  %v1917_v45 = vperm.slane %v1853_v40, 0 }
 0x251   : > { %2039 = vst [vmem:[#allocation1 + $0x2] ss:$4 sm:$0xff] %v1898_v59  ;;  %v1918_v59 = vperm.slane %v1854_v22, 0 }
 0x252   : > { %2040 = vst [vmem:[#allocation1 + $0x3] ss:$4 sm:$0xff] %v1899_v54  ;;  %v1919_v54 = vperm.slane %v1855_v20, 0 }
 0x253   : > { %2171 = vst [vmem:[%s3612_s6 + $0xa0] sm:$0xff] %v2139_v18 }
 0x254   : > { %v2036_v61 = vld.sshfl [vmem:[#allocation1 + $0x20] sm:$0xff pattern:$0x73625140] }
 0x255   : > { %2041 = vst [vmem:[#allocation1 + $0x20] ss:$4 sm:$0xff] %v1900_v43  ;;  %v2140_v42 = vadd.f32 %v2036_v61, %v3653_v48  ;;  %v1907_v48 = vperm.slane %v1844_v31, 0 }
 0x256   : > { %2042 = vst [vmem:[#allocation1 + $0x21] ss:$4 sm:$0xff] %v1901_v56  ;;  %v1783_v15 = vpop.f32.mrf.mxu2 }
 0x257   : > { %2043 = vst [vmem:[#allocation1 + $0x22] ss:$4 sm:$0xff] %v1902_v26 }
 0x258   : > { %2044 = vst [vmem:[#allocation1 + $0x23] ss:$4 sm:$0xff] %v1903_v6 }
 0x259   : > { %2172 = vst [vmem:[%s3612_s6 + $0xa8] sm:$0xff] %v2140_v42  ;;  %v2045_v11 = vld.sshfl [vmem:[#allocation1] sm:$0xff pattern:$0x73625140] }
 0x25a   : > { %v2141_v35 = vadd.f32 %v2045_v11, %v3657_v12  ;;  %2047 = vst [vmem:[#allocation1] ss:$4 sm:$0xff] %v1904_v25 }
 0x25b   : > { %2048 = vst [vmem:[#allocation1 + $0x1] ss:$4 sm:$0xff] %v1905_v50 }
 0x25c   : > { %2173 = vst [vmem:[%s3612_s6 + $0xb0] sm:$0xff] %v2141_v35 }
 0x25d   : > { %2049 = vst [vmem:[#allocation1 + $0x2] ss:$4 sm:$0xff] %v1906_v14 }
 0x25e   : > { %2050 = vst [vmem:[#allocation1 + $0x3] ss:$4 sm:$0xff] %v1907_v48 }
 0x25f   : > { %v2046_v16 = vld.sshfl [vmem:[#allocation1 + $0x20] sm:$0xff pattern:$0x73625140] }
 0x260   : > { %v2142_v34 = vadd.f32 %v2046_v16, %v3662_v13  ;;  %2051 = vst [vmem:[#allocation1 + $0x20] ss:$4 sm:$0xff] %v1908_v49  ;;  %v1852_v13 = vrot.slane %v1662_v53, 4 }
 0x261   : > { %2052 = vst [vmem:[#allocation1 + $0x21] ss:$4 sm:$0xff] %v1909_v17 }
 0x262   : > { %2174 = vst [vmem:[%s3612_s6 + $0xb8] sm:$0xff] %v2142_v34  ;;  %v1916_v19 = vperm.slane %v1852_v13, 0 }
 0x263   : > { %2053 = vst [vmem:[#allocation1 + $0x22] ss:$4 sm:$0xff] %v1910_v55 }
 0x264   : > { %2054 = vst [vmem:[#allocation1 + $0x23] ss:$4 sm:$0xff] %v1911_v9 }
 0x265   : > { %v2055_v38 = vld.sshfl [vmem:[#allocation1] sm:$0xff pattern:$0x73625140] }
 0x266   : > { %v2143_v33 = vadd.f32 %v2055_v38, %v1768_v28  ;;  %2057 = vst [vmem:[#allocation1] ss:$4 sm:$0xff] %v1904_v25  ;;  %v1786_v28 = vpop.f32.mrf.mxu2 }
 0x267   : > { %2058 = vst [vmem:[#allocation1 + $0x1] ss:$4 sm:$0xff] %v1905_v50 }
 0x268   : > { %2175 = vst [vmem:[%s3612_s6 + $0xc0] sm:$0xff] %v2143_v33 }
 0x269   : > { %2059 = vst [vmem:[#allocation1 + $0x2] ss:$4 sm:$0xff] %v1906_v14 }
 0x26a   : > { %2060 = vst [vmem:[#allocation1 + $0x3] ss:$4 sm:$0xff] %v1907_v48 }
 0x26b   : > { %v2056_v32 = vld.sshfl [vmem:[#allocation1 + $0x20] sm:$0xff pattern:$0x73625140] }
 0x26c   : > { %v2144_v12 = vadd.f32 %v2056_v32, %v1771_v41  ;;  %2061 = vst [vmem:[#allocation1 + $0x20] ss:$4 sm:$0xff] %v1908_v49 }
 0x26d   : > { %2062 = vst [vmem:[#allocation1 + $0x21] ss:$4 sm:$0xff] %v1909_v17 }
 0x26e   : > { %2176 = vst [vmem:[%s3612_s6 + $0xc8] sm:$0xff] %v2144_v12  ;;  %v1789_v26 = vpop.f32.mrf.mxu2 }
 0x26f   : > { %2063 = vst [vmem:[#allocation1 + $0x22] ss:$4 sm:$0xff] %v1910_v55 }
 0x270   : > { %2064 = vst [vmem:[#allocation1 + $0x23] ss:$4 sm:$0xff] %v1911_v9 }
 0x271   : > { %v2065_v3 = vld.sshfl [vmem:[#allocation1] sm:$0xff pattern:$0x73625140] }
 0x272   : > { %v2145_v52 = vadd.f32 %v2065_v3, %v1774_v0  ;;  %2067 = vst [vmem:[#allocation1] ss:$4 sm:$0xff] %v1912_v30 }
 0x273   : > { %2068 = vst [vmem:[#allocation1 + $0x1] ss:$4 sm:$0xff] %v1913_v24 }
 0x274   : > { %2177 = vst [vmem:[%s3612_s6 + $0xd0] sm:$0xff] %v2145_v52 }
 0x275   : > { %2069 = vst [vmem:[#allocation1 + $0x2] ss:$4 sm:$0xff] %v1914_v62 }
 0x276   : > { %2070 = vst [vmem:[#allocation1 + $0x3] ss:$4 sm:$0xff] %v1915_v29 }
 0x277   : > { %v2066_v23 = vld.sshfl [vmem:[#allocation1 + $0x20] sm:$0xff pattern:$0x73625140] }
 0x278   : > { %v2146_v10 = vadd.f32 %v2066_v23, %v1777_v44  ;;  %2071 = vst [vmem:[#allocation1 + $0x20] ss:$4 sm:$0xff] %v1916_v19 }
 0x279   : > { %2072 = vst [vmem:[#allocation1 + $0x21] ss:$4 sm:$0xff] %v1917_v45 }
 0x27a   : > { %2178 = vst [vmem:[%s3612_s6 + $0xd8] sm:$0xff] %v2146_v10 }
 0x27b   : > { %2073 = vst [vmem:[#allocation1 + $0x22] ss:$4 sm:$0xff] %v1918_v59 }
 0x27c   : > { %2074 = vst [vmem:[#allocation1 + $0x23] ss:$4 sm:$0xff] %v1919_v54 }
 0x27d   : > { %v2075_v63 = vld.sshfl [vmem:[#allocation1] sm:$0xff pattern:$0x73625140] }
 0x27e   : > { %v2147_v1 = vadd.f32 %v2075_v63, %v1780_v60  ;;  %2077 = vst [vmem:[#allocation1] ss:$4 sm:$0xff] %v1912_v30 }
 0x27f   : > { %2078 = vst [vmem:[#allocation1 + $0x1] ss:$4 sm:$0xff] %v1913_v24 }
 0x280   : > { %2179 = vst [vmem:[%s3612_s6 + $0xe0] sm:$0xff] %v2147_v1 }
 0x281   : > { %2079 = vst [vmem:[#allocation1 + $0x2] ss:$4 sm:$0xff] %v1914_v62 }
 0x282   : > { %2080 = vst [vmem:[#allocation1 + $0x3] ss:$4 sm:$0xff] %v1915_v29 }
 0x283   : > { %v2076_v43 = vld.sshfl [vmem:[#allocation1 + $0x20] sm:$0xff pattern:$0x73625140] }
 0x284   : > { %v2148_v39 = vadd.f32 %v2076_v43, %v1783_v15  ;;  %2081 = vst [vmem:[#allocation1 + $0x20] ss:$4 sm:$0xff] %v1916_v19 }
 0x285   : > { %2082 = vst [vmem:[#allocation1 + $0x21] ss:$4 sm:$0xff] %v1917_v45 }
 0x286   : > { %2180 = vst [vmem:[%s3612_s6 + $0xe8] sm:$0xff] %v2148_v39 }
 0x287   : > { %2083 = vst [vmem:[#allocation1 + $0x22] ss:$4 sm:$0xff] %v1918_v59 }
 0x288   : > { %2084 = vst [vmem:[#allocation1 + $0x23] ss:$4 sm:$0xff] %v1919_v54 }
 0x289   : > { %v2085_v56 = vld.sshfl [vmem:[#allocation1] sm:$0xff pattern:$0x73625140] }
 0x28a   : > { %v2149_v51 = vadd.f32 %v2085_v56, %v1786_v28 }
 0x28c   : > { %2181 = vst [vmem:[%s3612_s6 + $0xf0] sm:$0xff] %v2149_v51 }
 0x28f   : > { %v2086_v6 = vld.sshfl [vmem:[#allocation1 + $0x20] sm:$0xff pattern:$0x73625140] }
 0x290   : > { %v2150_v2 = vadd.f32 %v2086_v6, %v1789_v26 }
 0x292   : > { %2182 = vst [vmem:[%s3612_s6 + $0xf8] sm:$0xff] %v2150_v2 }
 0x293   : > { %2548 = shalt.err (!%p2545_p10)
}
 0x294   : > { %s2597_s20 = smov 128   ;;  %s2598_s21 = smov 8  }
 0x295   : > { %2337 = dma.vmem_to_hbm [thread:$0]  (%p2696_p3), %s2197_s9, 4096, %s2199_s24, %s2184_s23, %s2597_s20, %s2597_s20, %s2598_s21  }
 0x296 PF: > { %s2213_s26 = sand.u32 1, %s2579_s15   ;;  %p3749_p12 = scmp.ge.s32.totalorder %s2591_s18, 2 }
 0x297   : > { %s2214_s6 = scalar_lea.sflag [#allocation4], %s2213_s26 }
 0x298   : > { %p2351_p13 = pnand %p3749_p12, %p2659_p6 }
 0x29a   : > { %p2352_p0 = pneg %p2351_p13 }
 0x29c   : > { %2574 = dma.done.wait (%p2352_p0), %s2214_s6, 4096  }
 0x29d   : > { %2576 = vsyncadd (%p2352_p0), %s2214_s6, 4294963200  ;;  %p18_p5 = scmp.ge.s32.totalorder %s2686_s10, 4   ;;  %s3750_s15 = smov %s2583_s16 }
 0x29e   : > { %s3751_s16 = smov %s2587_s17  ;;  %s3752_s17 = smov %s2702_s14 }
 0x29f   : > { %s3753_s18 = smov %s2686_s10  ;;  %20 = sbr.rel (!%p18_p5) target bundleno = 6 (0x6), region = 113 }
 0x2a4   :  { %2220 = vsyncpa [#allocation3], 1 }
 0x2a5   :  { %2222 = vsyncpa [#allocation3 + $0x1], 1 }
 0x2a6   :  { %2223 = vsyncpa [#allocation6], 1 }
 0x2a7   :  { %2224 = vsyncpa [#allocation4], 1 }
 0x2a8   :  { %2226 = vsyncpa [#allocation4 + $0x1], 1 }

</bundles_post_ra>
